<compile_context>
chip_gen: v7x
topology: tpu7x:2x2x1
jax: 0.10.0
libtpu: 0.0.40
codegen_flags: <defaults>
</compile_context>

<pallas_src>
import functools

import jax
import jax.numpy as jnp
from jax.experimental import pallas as pl


def _ode_gnn_kernel(seq_len, hidden_dim,
                    x0_ref, adj_ref, we1_ref, be1_ref, eg_ref, eb_ref,
                    we2_ref, be2_ref, wg1_ref, bg1_ref, gg_ref, gb_ref,
                    wg2_ref, bg2_ref, whead_ref, bhead_ref, wcorr_ref,
                    out_ref):
    H = hidden_dim  # noqa: F841  (kept for readability / future tiling)

    def layernorm(h, gamma, beta, eps=1e-5):
        # independent mean / mean-of-squares -> the two cross-lane reductions pipeline
        mu = jnp.mean(h, axis=-1, keepdims=True)
        ms = jnp.mean(h * h, axis=-1, keepdims=True)
        var = ms - mu * mu
        return (h - mu) * jax.lax.rsqrt(var + eps) * gamma + beta

    # ---- loop-invariant operands: load once, close over values in the time loop ----
    adj_s = adj_ref[...]                       # sqrt(H) * (I + 0.02 * blockdiag(adj)), (BN, BN)
    wg1, bg1 = wg1_ref[...], bg1_ref[...]      # (2H, H), (1, H)
    gg, gb = gg_ref[...], gb_ref[...]
    wg2, bg2 = wg2_ref[...], bg2_ref[...]      # (H, H), (1, H)
    whead, bhead = whead_ref[...], bhead_ref[...]   # (H, 2H), (1, 2H)
    wcorr = wcorr_ref[...]                     # (2H, 2H): [:H,:H] = -0.03*Wx, rest 0

    # ---- encoder: Linear(C,H) -> LayerNorm -> ReLU -> Linear(H,2H) ----
    h = jnp.dot(x0_ref[...], we1_ref[...], preferred_element_type=jnp.float32) + be1_ref[...]
    h = jnp.maximum(layernorm(h, eg_ref[...], eb_ref[...]), 0.0)
    z0 = jnp.dot(h, we2_ref[...], preferred_element_type=jnp.float32) + be2_ref[...]
    out_ref[0] = z0

    # ---- Euler integration of StableGNNFunc, dt = 1.0, z carried in vregs ----
    def step(t, z):
        # decay correction depends only on z_{t-1}; issued first so it overlaps the chain
        corr = jnp.dot(z, wcorr, preferred_element_type=jnp.float32)

        # gnn_layer: Linear(2H,H) -> LayerNorm -> ReLU -> Linear(H,H)
        h = jnp.dot(z, wg1, preferred_element_type=jnp.float32) + bg1
        h = jnp.maximum(layernorm(h, gg, gb), 0.0)
        tr = jnp.dot(h, wg2, preferred_element_type=jnp.float32) + bg2

        # F.normalize(p=2, dim=-1); the * sqrt(H) rescale is folded into adj_s
        ssq_tr = jnp.sum(tr * tr, axis=-1, keepdims=True)
        tr = tr * jax.lax.rsqrt(jnp.maximum(ssq_tr, 1e-24))

        # transformed + 0.02 * neighbor_influence (identity + coef folded into adj_s)
        base = jnp.dot(adj_s, tr, preferred_element_type=jnp.float32)

        # fused dx/dm heads: lanes [:H] = tanh((base - 0.03*zx)@Wx + bx),
        #                    lanes [H:] = tanh(base@Wm + bm)
        dz = jnp.tanh(jnp.dot(base, whead, preferred_element_type=jnp.float32) + corr + bhead)

        # norm clipping over the 2H-wide dz: scale = min(5 / ||dz||, 1)
        ssq = jnp.sum(dz * dz, axis=-1, keepdims=True)
        z_new = z + dz * jnp.minimum(5.0 * jax.lax.rsqrt(ssq + 1e-16), 1.0)
        # TODO(synk): torch.isnan(...)/nan_to_num guard skipped (finite inputs assumed).

        out_ref[t] = z_new
        return z_new

    jax.lax.fori_loop(1, seq_len, step, z0, unroll=True)


def simple_neural_ode_gnn(x, params, adj, hidden_dim):
    B, S, N, C = x.shape
    H = hidden_dim
    BN = B * N
    f32 = lambda a: jnp.asarray(a, jnp.float32)

    x0 = f32(x[:, 0]).reshape(BN, C)                 # batch folded into matmul M dim

    we1, be1 = f32(params["we1"]), f32(params["be1"])
    eg, eb = f32(params["eg"]), f32(params["eb"])
    we2, be2 = f32(params["we2"]), f32(params["be2"])          # (H, 2H), (1, 2H)
    wg1, bg1 = f32(params["wg1"]), f32(params["bg1"])          # (2H, H), (1, H)
    gg, gb = f32(params["gg"]), f32(params["gb"])
    wg2, bg2 = f32(params["wg2"]), f32(params["bg2"])
    wx, bx = f32(params["wx"]), f32(params["bx"])
    wm, bm = f32(params["wm"]), f32(params["bm"])

    # dx/dm head weights fused along the output (lane) dim -> one K=H, N=2H matmul
    w_head = jnp.concatenate([wx, wm], axis=1)                  # (H, 2H)
    b_head = jnp.concatenate([bx, bm], axis=1)                  # (1, 2H)
    # decay term (-0.03 * z_x @ Wx) placed in the x-half of the 2H lanes, expressed as a
    # single z @ W_corr matmul so the kernel never slices z at a mid-vreg lane offset.
    w_corr = jnp.zeros((2 * H, 2 * H), jnp.float32).at[:H, :H].set(-0.03 * wx)

    # Identity + diffusion-scaled block-diagonal (over batch) adjacency, with the sqrt(H)
    # factor of the post-normalize rescale folded in:  base = adj_s @ (tr / ||tr||).
    adj_s = (float(H) ** 0.5) * (jnp.eye(BN, dtype=jnp.float32)
                                 + 0.02 * jnp.kron(jnp.eye(B, dtype=jnp.float32), f32(adj)))

    kernel = functools.partial(_ode_gnn_kernel, S, H)
    out = pl.pallas_call(
        kernel,
        out_shape=jax.ShapeDtypeStruct((S, BN, 2 * H), jnp.float32),
    )(x0, adj_s, we1, be1, eg, eb, we2, be2,
      wg1, bg1, gg, gb, wg2, bg2, w_head, b_head, w_corr)

    # (S, B, N, 2H) "solution", matching the PyTorch module's return layout (free reshape).
    return out.reshape(S, B, N, 2 * H)


def init_params(key, in_channels, hidden_dim):
    H = hidden_dim
    ks = jax.random.split(key, 12)

    def lin_w(k, fi, fo):
        return (0.1 * jax.random.normal(k, (fi, fo))).astype(jnp.float32)

    def lin_b(k, fo):
        return (0.05 * jax.random.normal(k, (1, fo))).astype(jnp.float32)

    return {
        "we1": lin_w(ks[0], in_channels, H), "be1": lin_b(ks[1], H),
        "eg": jnp.ones((1, H), jnp.float32), "eb": jnp.zeros((1, H), jnp.float32),
        "we2": lin_w(ks[2], H, 2 * H),       "be2": lin_b(ks[3], 2 * H),
        "wg1": lin_w(ks[4], 2 * H, H),       "bg1": lin_b(ks[5], H),
        "gg": jnp.ones((1, H), jnp.float32), "gb": jnp.zeros((1, H), jnp.float32),
        "wg2": lin_w(ks[6], H, H),           "bg2": lin_b(ks[7], H),
        "wx": lin_w(ks[8], H, H),            "bx": lin_b(ks[9], H),
        "wm": lin_w(ks[10], H, H),           "bm": lin_b(ks[11], H),
    }


def ref_forward(x, p, adj, H):
    """Pure-JAX reference of the PyTorch forward (for verification)."""
    B, S, N, C = x.shape

    def ln(h, g, b):
        mu = h.mean(-1, keepdims=True)
        var = ((h - mu) ** 2).mean(-1, keepdims=True)
        return (h - mu) / jnp.sqrt(var + 1e-5) * g + b

    x0 = x[:, 0]
    h = jnp.maximum(ln(x0 @ p["we1"] + p["be1"], p["eg"], p["eb"]), 0.0)
    z = h @ p["we2"] + p["be2"]
    sol = [z]
    for _ in range(1, S):
        h = jnp.maximum(ln(z @ p["wg1"] + p["bg1"], p["gg"], p["gb"]), 0.0)
        tr = h @ p["wg2"] + p["bg2"]
        tr = tr / jnp.maximum(jnp.linalg.norm(tr, axis=-1, keepdims=True), 1e-12) * jnp.sqrt(float(H))
        neigh = jnp.einsum("nm,bmh->bnh", adj, tr)
        dx = jnp.tanh((tr + 0.02 * neigh - 0.03 * z[..., :H]) @ p["wx"] + p["bx"])
        dm = jnp.tanh((tr + 0.02 * neigh) @ p["wm"] + p["bm"])
        dz = jnp.concatenate([dx, dm], axis=-1)
        nrm = jnp.linalg.norm(dz, axis=-1, keepdims=True)
        dz = dz * jnp.minimum(5.0 / (nrm + 1e-8), 1.0)
        z = z + dz
        sol.append(z)
    return jnp.stack(sol, 0)


if __name__ == "__main__":
    B, S, N, C, H = 2, 8, 8, 4, 32

    key = jax.random.PRNGKey(0)
    kx, kp = jax.random.split(key)
    x = jax.random.normal(kx, (B, S, N, C), jnp.float32)
    params = init_params(kp, C, H)

    # deterministic ring adjacency with self-loops, row-normalized
    eye = jnp.eye(N, dtype=jnp.float32)
    adj = eye + jnp.roll(eye, 1, axis=1) + jnp.roll(eye, -1, axis=1)
    adj = adj / jnp.sum(adj, axis=1, keepdims=True)

    out = simple_neural_ode_gnn(x, params, adj, H)
    out = jax.block_until_ready(out)

    ref = jax.block_until_ready(ref_forward(x, params, adj, H))
    assert out.shape == (S, B, N, 2 * H)
    assert jnp.max(jnp.abs(out - ref)) < 2e-3, float(jnp.max(jnp.abs(out - ref)))

    print("KERNEL_OK")
</pallas_src>

<mosaic_0001>
module attributes {stable_mosaic.version = 11 : i64} {
  func.func @_ode_gnn_kernel(%arg0: memref<16x4xf32, #tpu.memory_space<vmem>>, %arg1: memref<16x16xf32, #tpu.memory_space<vmem>>, %arg2: memref<4x32xf32, #tpu.memory_space<vmem>>, %arg3: memref<1x32xf32, #tpu.memory_space<vmem>>, %arg4: memref<1x32xf32, #tpu.memory_space<vmem>>, %arg5: memref<1x32xf32, #tpu.memory_space<vmem>>, %arg6: memref<32x64xf32, #tpu.memory_space<vmem>>, %arg7: memref<1x64xf32, #tpu.memory_space<vmem>>, %arg8: memref<64x32xf32, #tpu.memory_space<vmem>>, %arg9: memref<1x32xf32, #tpu.memory_space<vmem>>, %arg10: memref<1x32xf32, #tpu.memory_space<vmem>>, %arg11: memref<1x32xf32, #tpu.memory_space<vmem>>, %arg12: memref<32x32xf32, #tpu.memory_space<vmem>>, %arg13: memref<1x32xf32, #tpu.memory_space<vmem>>, %arg14: memref<32x64xf32, #tpu.memory_space<vmem>>, %arg15: memref<1x64xf32, #tpu.memory_space<vmem>>, %arg16: memref<64x64xf32, #tpu.memory_space<vmem>>, %arg17: memref<8x16x64xf32, #tpu.memory_space<vmem>>) attributes {dimension_semantics = [], scalar_prefetch = 0 : i64, scratch_operands = 0 : i64, tpu.core_type = #tpu.core_type<tc>} {
    %c0 = arith.constant 0 : index
    %c0_0 = arith.constant 0 : index
    %0 = vector.load %arg1[%c0, %c0_0] : memref<16x16xf32, #tpu.memory_space<vmem>>, vector<16x16xf32>
    %c0_1 = arith.constant 0 : index
    %c0_2 = arith.constant 0 : index
    %1 = vector.load %arg8[%c0_1, %c0_2] : memref<64x32xf32, #tpu.memory_space<vmem>>, vector<64x32xf32>
    %c0_3 = arith.constant 0 : index
    %c0_4 = arith.constant 0 : index
    %2 = vector.load %arg9[%c0_3, %c0_4] : memref<1x32xf32, #tpu.memory_space<vmem>>, vector<1x32xf32>
    %c0_5 = arith.constant 0 : index
    %c0_6 = arith.constant 0 : index
    %3 = vector.load %arg10[%c0_5, %c0_6] : memref<1x32xf32, #tpu.memory_space<vmem>>, vector<1x32xf32>
    %c0_7 = arith.constant 0 : index
    %c0_8 = arith.constant 0 : index
    %4 = vector.load %arg11[%c0_7, %c0_8] : memref<1x32xf32, #tpu.memory_space<vmem>>, vector<1x32xf32>
    %c0_9 = arith.constant 0 : index
    %c0_10 = arith.constant 0 : index
    %5 = vector.load %arg12[%c0_9, %c0_10] : memref<32x32xf32, #tpu.memory_space<vmem>>, vector<32x32xf32>
    %c0_11 = arith.constant 0 : index
    %c0_12 = arith.constant 0 : index
    %6 = vector.load %arg13[%c0_11, %c0_12] : memref<1x32xf32, #tpu.memory_space<vmem>>, vector<1x32xf32>
    %c0_13 = arith.constant 0 : index
    %c0_14 = arith.constant 0 : index
    %7 = vector.load %arg14[%c0_13, %c0_14] : memref<32x64xf32, #tpu.memory_space<vmem>>, vector<32x64xf32>
    %c0_15 = arith.constant 0 : index
    %c0_16 = arith.constant 0 : index
    %8 = vector.load %arg15[%c0_15, %c0_16] : memref<1x64xf32, #tpu.memory_space<vmem>>, vector<1x64xf32>
    %c0_17 = arith.constant 0 : index
    %c0_18 = arith.constant 0 : index
    %9 = vector.load %arg16[%c0_17, %c0_18] : memref<64x64xf32, #tpu.memory_space<vmem>>, vector<64x64xf32>
    %c0_19 = arith.constant 0 : index
    %c0_20 = arith.constant 0 : index
    %10 = vector.load %arg0[%c0_19, %c0_20] : memref<16x4xf32, #tpu.memory_space<vmem>>, vector<16x4xf32>
    %c0_21 = arith.constant 0 : index
    %c0_22 = arith.constant 0 : index
    %11 = vector.load %arg2[%c0_21, %c0_22] : memref<4x32xf32, #tpu.memory_space<vmem>>, vector<4x32xf32>
    %cst = arith.constant dense<0.000000e+00> : vector<16x32xf32>
    %12 = tpu.matmul %10, %11, %cst {dimension_numbers = #tpu.dot_dimension_numbers<[1], [0], [0], [1], [0, 0, 1, 1], [], []>} : vector<16x4xf32>, vector<4x32xf32>, vector<16x32xf32> -> vector<16x32xf32>
    %c0_23 = arith.constant 0 : index
    %c0_24 = arith.constant 0 : index
    %13 = vector.load %arg3[%c0_23, %c0_24] : memref<1x32xf32, #tpu.memory_space<vmem>>, vector<1x32xf32>
    %14 = vector.broadcast %13 : vector<1x32xf32> to vector<16x32xf32>
    %15 = arith.addf %12, %14 : vector<16x32xf32>
    %c0_25 = arith.constant 0 : index
    %c0_26 = arith.constant 0 : index
    %16 = vector.load %arg4[%c0_25, %c0_26] : memref<1x32xf32, #tpu.memory_space<vmem>>, vector<1x32xf32>
    %c0_27 = arith.constant 0 : index
    %c0_28 = arith.constant 0 : index
    %17 = vector.load %arg5[%c0_27, %c0_28] : memref<1x32xf32, #tpu.memory_space<vmem>>, vector<1x32xf32>
    %cst_29 = arith.constant dense<0.000000e+00> : vector<16xf32>
    %18 = vector.multi_reduction <add>, %15, %cst_29 [1] : vector<16x32xf32> to vector<16xf32>
    %19 = vector.shape_cast %18 : vector<16xf32> to vector<16x1xf32>
    %cst_30 = arith.constant 3.200000e+01 : f32
    %20 = vector.broadcast %cst_30 : f32 to vector<16x1xf32>
    %21 = arith.divf %19, %20 : vector<16x1xf32>
    %22 = arith.mulf %15, %15 : vector<16x32xf32>
    %cst_31 = arith.constant dense<0.000000e+00> : vector<16xf32>
    %23 = vector.multi_reduction <add>, %22, %cst_31 [1] : vector<16x32xf32> to vector<16xf32>
    %24 = vector.shape_cast %23 : vector<16xf32> to vector<16x1xf32>
    %cst_32 = arith.constant 3.200000e+01 : f32
    %25 = vector.broadcast %cst_32 : f32 to vector<16x1xf32>
    %26 = arith.divf %24, %25 : vector<16x1xf32>
    %27 = arith.mulf %21, %21 : vector<16x1xf32>
    %28 = arith.subf %26, %27 : vector<16x1xf32>
    %29 = vector.broadcast %21 : vector<16x1xf32> to vector<16x32xf32>
    %30 = arith.subf %15, %29 : vector<16x32xf32>
    %cst_33 = arith.constant 9.99999974E-6 : f32
    %31 = vector.broadcast %cst_33 : f32 to vector<16x1xf32>
    %32 = arith.addf %28, %31 : vector<16x1xf32>
    %33 = math.rsqrt %32 : vector<16x1xf32>
    %34 = vector.broadcast %33 : vector<16x1xf32> to vector<16x32xf32>
    %35 = arith.mulf %30, %34 : vector<16x32xf32>
    %36 = vector.broadcast %16 : vector<1x32xf32> to vector<16x32xf32>
    %37 = arith.mulf %35, %36 : vector<16x32xf32>
    %38 = vector.broadcast %17 : vector<1x32xf32> to vector<16x32xf32>
    %39 = arith.addf %37, %38 : vector<16x32xf32>
    %cst_34 = arith.constant 0.000000e+00 : f32
    %40 = vector.broadcast %cst_34 : f32 to vector<16x32xf32>
    %41 = arith.maximumf %39, %40 : vector<16x32xf32>
    %c0_35 = arith.constant 0 : index
    %c0_36 = arith.constant 0 : index
    %42 = vector.load %arg6[%c0_35, %c0_36] : memref<32x64xf32, #tpu.memory_space<vmem>>, vector<32x64xf32>
    %cst_37 = arith.constant dense<0.000000e+00> : vector<16x64xf32>
    %43 = tpu.matmul %41, %42, %cst_37 {dimension_numbers = #tpu.dot_dimension_numbers<[1], [0], [0], [1], [0, 0, 1, 1], [], []>} : vector<16x32xf32>, vector<32x64xf32>, vector<16x64xf32> -> vector<16x64xf32>
    %c0_38 = arith.constant 0 : index
    %c0_39 = arith.constant 0 : index
    %44 = vector.load %arg7[%c0_38, %c0_39] : memref<1x64xf32, #tpu.memory_space<vmem>>, vector<1x64xf32>
    %45 = vector.broadcast %44 : vector<1x64xf32> to vector<16x64xf32>
    %46 = arith.addf %43, %45 : vector<16x64xf32>
    %c0_40 = arith.constant 0 : index
    %c0_41 = arith.constant 0 : index
    %c0_42 = arith.constant 0 : index
    %47 = vector.load %arg17[%c0_40, %c0_41, %c0_42] : memref<8x16x64xf32, #tpu.memory_space<vmem>>, vector<1x16x64xf32>
    %48 = vector.shape_cast %47 : vector<1x16x64xf32> to vector<16x64xf32>
    %49 = vector.shape_cast %46 : vector<16x64xf32> to vector<1x16x64xf32>
    tpu.vector_store %arg17[%c0_40, %c0_41, %c0_42], %49 {strides = array<i32>} : memref<8x16x64xf32, #tpu.memory_space<vmem>>, vector<1x16x64xf32>,
    %c1_i32 = arith.constant 1 : i32
    %cst_43 = arith.constant dense<0.000000e+00> : vector<16x64xf32>
    %50 = tpu.matmul %46, %9, %cst_43 {dimension_numbers = #tpu.dot_dimension_numbers<[1], [0], [0], [1], [0, 0, 1, 1], [], []>} : vector<16x64xf32>, vector<64x64xf32>, vector<16x64xf32> -> vector<16x64xf32>
    %cst_44 = arith.constant dense<0.000000e+00> : vector<16x32xf32>
    %51 = tpu.matmul %46, %1, %cst_44 {dimension_numbers = #tpu.dot_dimension_numbers<[1], [0], [0], [1], [0, 0, 1, 1], [], []>} : vector<16x64xf32>, vector<64x32xf32>, vector<16x32xf32> -> vector<16x32xf32>
    %52 = vector.broadcast %2 : vector<1x32xf32> to vector<16x32xf32>
    %53 = arith.addf %51, %52 : vector<16x32xf32>
    %cst_45 = arith.constant dense<0.000000e+00> : vector<16xf32>
    %54 = vector.multi_reduction <add>, %53, %cst_45 [1] : vector<16x32xf32> to vector<16xf32>
    %55 = vector.shape_cast %54 : vector<16xf32> to vector<16x1xf32>
    %cst_46 = arith.constant 3.200000e+01 : f32
    %56 = vector.broadcast %cst_46 : f32 to vector<16x1xf32>
    %57 = arith.divf %55, %56 : vector<16x1xf32>
    %58 = arith.mulf %53, %53 : vector<16x32xf32>
    %cst_47 = arith.constant dense<0.000000e+00> : vector<16xf32>
    %59 = vector.multi_reduction <add>, %58, %cst_47 [1] : vector<16x32xf32> to vector<16xf32>
    %60 = vector.shape_cast %59 : vector<16xf32> to vector<16x1xf32>
    %cst_48 = arith.constant 3.200000e+01 : f32
    %61 = vector.broadcast %cst_48 : f32 to vector<16x1xf32>
    %62 = arith.divf %60, %61 : vector<16x1xf32>
    %63 = arith.mulf %57, %57 : vector<16x1xf32>
    %64 = arith.subf %62, %63 : vector<16x1xf32>
    %65 = vector.broadcast %57 : vector<16x1xf32> to vector<16x32xf32>
    %66 = arith.subf %53, %65 : vector<16x32xf32>
    %cst_49 = arith.constant 9.99999974E-6 : f32
    %67 = vector.broadcast %cst_49 : f32 to vector<16x1xf32>
    %68 = arith.addf %64, %67 : vector<16x1xf32>
    %69 = math.rsqrt %68 : vector<16x1xf32>
    %70 = vector.broadcast %69 : vector<16x1xf32> to vector<16x32xf32>
    %71 = arith.mulf %66, %70 : vector<16x32xf32>
    %72 = vector.broadcast %3 : vector<1x32xf32> to vector<16x32xf32>
    %73 = arith.mulf %71, %72 : vector<16x32xf32>
    %74 = vector.broadcast %4 : vector<1x32xf32> to vector<16x32xf32>
    %75 = arith.addf %73, %74 : vector<16x32xf32>
    %cst_50 = arith.constant 0.000000e+00 : f32
    %76 = vector.broadcast %cst_50 : f32 to vector<16x32xf32>
    %77 = arith.maximumf %75, %76 : vector<16x32xf32>
    %cst_51 = arith.constant dense<0.000000e+00> : vector<16x32xf32>
    %78 = tpu.matmul %77, %5, %cst_51 {dimension_numbers = #tpu.dot_dimension_numbers<[1], [0], [0], [1], [0, 0, 1, 1], [], []>} : vector<16x32xf32>, vector<32x32xf32>, vector<16x32xf32> -> vector<16x32xf32>
    %79 = vector.broadcast %6 : vector<1x32xf32> to vector<16x32xf32>
    %80 = arith.addf %78, %79 : vector<16x32xf32>
    %81 = arith.mulf %80, %80 : vector<16x32xf32>
    %cst_52 = arith.constant dense<0.000000e+00> : vector<16xf32>
    %82 = vector.multi_reduction <add>, %81, %cst_52 [1] : vector<16x32xf32> to vector<16xf32>
    %83 = vector.shape_cast %82 : vector<16xf32> to vector<16x1xf32>
    %cst_53 = arith.constant 1.000000e-24 : f32
    %84 = vector.broadcast %cst_53 : f32 to vector<16x1xf32>
    %85 = arith.maximumf %83, %84 : vector<16x1xf32>
    %86 = math.rsqrt %85 : vector<16x1xf32>
    %87 = vector.broadcast %86 : vector<16x1xf32> to vector<16x32xf32>
    %88 = arith.mulf %80, %87 : vector<16x32xf32>
    %cst_54 = arith.constant dense<0.000000e+00> : vector<16x32xf32>
    %89 = tpu.matmul %0, %88, %cst_54 {dimension_numbers = #tpu.dot_dimension_numbers<[1], [0], [0], [1], [0, 0, 1, 1], [], []>} : vector<16x16xf32>, vector<16x32xf32>, vector<16x32xf32> -> vector<16x32xf32>
    %cst_55 = arith.constant dense<0.000000e+00> : vector<16x64xf32>
    %90 = tpu.matmul %89, %7, %cst_55 {dimension_numbers = #tpu.dot_dimension_numbers<[1], [0], [0], [1], [0, 0, 1, 1], [], []>} : vector<16x32xf32>, vector<32x64xf32>, vector<16x64xf32> -> vector<16x64xf32>
    %91 = arith.addf %90, %50 : vector<16x64xf32>
    %92 = vector.broadcast %8 : vector<1x64xf32> to vector<16x64xf32>
    %93 = arith.addf %91, %92 : vector<16x64xf32>
    %94 = math.tanh %93 : vector<16x64xf32>
    %95 = arith.mulf %94, %94 : vector<16x64xf32>
    %cst_56 = arith.constant dense<0.000000e+00> : vector<16xf32>
    %96 = vector.multi_reduction <add>, %95, %cst_56 [1] : vector<16x64xf32> to vector<16xf32>
    %97 = vector.shape_cast %96 : vector<16xf32> to vector<16x1xf32>
    %cst_57 = arith.constant 1.000000e-16 : f32
    %98 = vector.broadcast %cst_57 : f32 to vector<16x1xf32>
    %99 = arith.addf %97, %98 : vector<16x1xf32>
    %100 = math.rsqrt %99 : vector<16x1xf32>
    %cst_58 = arith.constant 5.000000e+00 : f32
    %101 = vector.broadcast %cst_58 : f32 to vector<16x1xf32>
    %102 = arith.mulf %101, %100 : vector<16x1xf32>
    %cst_59 = arith.constant 1.000000e+00 : f32
    %103 = vector.broadcast %cst_59 : f32 to vector<16x1xf32>
    %104 = arith.minimumf %102, %103 : vector<16x1xf32>
    %105 = vector.broadcast %104 : vector<16x1xf32> to vector<16x64xf32>
    %106 = arith.mulf %94, %105 : vector<16x64xf32>
    %107 = arith.addf %46, %106 : vector<16x64xf32>
    %108 = arith.index_cast %c1_i32 : i32 to index
    %c0_60 = arith.constant 0 : index
    %c0_61 = arith.constant 0 : index
    %109 = vector.load %arg17[%108, %c0_60, %c0_61] : memref<8x16x64xf32, #tpu.memory_space<vmem>>, vector<1x16x64xf32>
    %110 = vector.shape_cast %109 : vector<1x16x64xf32> to vector<16x64xf32>
    %111 = vector.shape_cast %107 : vector<16x64xf32> to vector<1x16x64xf32>
    tpu.vector_store %arg17[%108, %c0_60, %c0_61], %111 {strides = array<i32>} : memref<8x16x64xf32, #tpu.memory_space<vmem>>, vector<1x16x64xf32>,
    %c2_i32 = arith.constant 2 : i32
    %cst_62 = arith.constant dense<0.000000e+00> : vector<16x64xf32>
    %112 = tpu.matmul %107, %9, %cst_62 {dimension_numbers = #tpu.dot_dimension_numbers<[1], [0], [0], [1], [0, 0, 1, 1], [], []>} : vector<16x64xf32>, vector<64x64xf32>, vector<16x64xf32> -> vector<16x64xf32>
    %cst_63 = arith.constant dense<0.000000e+00> : vector<16x32xf32>
    %113 = tpu.matmul %107, %1, %cst_63 {dimension_numbers = #tpu.dot_dimension_numbers<[1], [0], [0], [1], [0, 0, 1, 1], [], []>} : vector<16x64xf32>, vector<64x32xf32>, vector<16x32xf32> -> vector<16x32xf32>
    %114 = vector.broadcast %2 : vector<1x32xf32> to vector<16x32xf32>
    %115 = arith.addf %113, %114 : vector<16x32xf32>
    %cst_64 = arith.constant dense<0.000000e+00> : vector<16xf32>
    %116 = vector.multi_reduction <add>, %115, %cst_64 [1] : vector<16x32xf32> to vector<16xf32>
    %117 = vector.shape_cast %116 : vector<16xf32> to vector<16x1xf32>
    %cst_65 = arith.constant 3.200000e+01 : f32
    %118 = vector.broadcast %cst_65 : f32 to vector<16x1xf32>
    %119 = arith.divf %117, %118 : vector<16x1xf32>
    %120 = arith.mulf %115, %115 : vector<16x32xf32>
    %cst_66 = arith.constant dense<0.000000e+00> : vector<16xf32>
    %121 = vector.multi_reduction <add>, %120, %cst_66 [1] : vector<16x32xf32> to vector<16xf32>
    %122 = vector.shape_cast %121 : vector<16xf32> to vector<16x1xf32>
    %cst_67 = arith.constant 3.200000e+01 : f32
    %123 = vector.broadcast %cst_67 : f32 to vector<16x1xf32>
    %124 = arith.divf %122, %123 : vector<16x1xf32>
    %125 = arith.mulf %119, %119 : vector<16x1xf32>
    %126 = arith.subf %124, %125 : vector<16x1xf32>
    %127 = vector.broadcast %119 : vector<16x1xf32> to vector<16x32xf32>
    %128 = arith.subf %115, %127 : vector<16x32xf32>
    %cst_68 = arith.constant 9.99999974E-6 : f32
    %129 = vector.broadcast %cst_68 : f32 to vector<16x1xf32>
    %130 = arith.addf %126, %129 : vector<16x1xf32>
    %131 = math.rsqrt %130 : vector<16x1xf32>
    %132 = vector.broadcast %131 : vector<16x1xf32> to vector<16x32xf32>
    %133 = arith.mulf %128, %132 : vector<16x32xf32>
    %134 = vector.broadcast %3 : vector<1x32xf32> to vector<16x32xf32>
    %135 = arith.mulf %133, %134 : vector<16x32xf32>
    %136 = vector.broadcast %4 : vector<1x32xf32> to vector<16x32xf32>
    %137 = arith.addf %135, %136 : vector<16x32xf32>
    %cst_69 = arith.constant 0.000000e+00 : f32
    %138 = vector.broadcast %cst_69 : f32 to vector<16x32xf32>
    %139 = arith.maximumf %137, %138 : vector<16x32xf32>
    %cst_70 = arith.constant dense<0.000000e+00> : vector<16x32xf32>
    %140 = tpu.matmul %139, %5, %cst_70 {dimension_numbers = #tpu.dot_dimension_numbers<[1], [0], [0], [1], [0, 0, 1, 1], [], []>} : vector<16x32xf32>, vector<32x32xf32>, vector<16x32xf32> -> vector<16x32xf32>
    %141 = vector.broadcast %6 : vector<1x32xf32> to vector<16x32xf32>
    %142 = arith.addf %140, %141 : vector<16x32xf32>
    %143 = arith.mulf %142, %142 : vector<16x32xf32>
    %cst_71 = arith.constant dense<0.000000e+00> : vector<16xf32>
    %144 = vector.multi_reduction <add>, %143, %cst_71 [1] : vector<16x32xf32> to vector<16xf32>
    %145 = vector.shape_cast %144 : vector<16xf32> to vector<16x1xf32>
    %cst_72 = arith.constant 1.000000e-24 : f32
    %146 = vector.broadcast %cst_72 : f32 to vector<16x1xf32>
    %147 = arith.maximumf %145, %146 : vector<16x1xf32>
    %148 = math.rsqrt %147 : vector<16x1xf32>
    %149 = vector.broadcast %148 : vector<16x1xf32> to vector<16x32xf32>
    %150 = arith.mulf %142, %149 : vector<16x32xf32>
    %cst_73 = arith.constant dense<0.000000e+00> : vector<16x32xf32>
    %151 = tpu.matmul %0, %150, %cst_73 {dimension_numbers = #tpu.dot_dimension_numbers<[1], [0], [0], [1], [0, 0, 1, 1], [], []>} : vector<16x16xf32>, vector<16x32xf32>, vector<16x32xf32> -> vector<16x32xf32>
    %cst_74 = arith.constant dense<0.000000e+00> : vector<16x64xf32>
    %152 = tpu.matmul %151, %7, %cst_74 {dimension_numbers = #tpu.dot_dimension_numbers<[1], [0], [0], [1], [0, 0, 1, 1], [], []>} : vector<16x32xf32>, vector<32x64xf32>, vector<16x64xf32> -> vector<16x64xf32>
    %153 = arith.addf %152, %112 : vector<16x64xf32>
    %154 = vector.broadcast %8 : vector<1x64xf32> to vector<16x64xf32>
    %155 = arith.addf %153, %154 : vector<16x64xf32>
    %156 = math.tanh %155 : vector<16x64xf32>
    %157 = arith.mulf %156, %156 : vector<16x64xf32>
    %cst_75 = arith.constant dense<0.000000e+00> : vector<16xf32>
    %158 = vector.multi_reduction <add>, %157, %cst_75 [1] : vector<16x64xf32> to vector<16xf32>
    %159 = vector.shape_cast %158 : vector<16xf32> to vector<16x1xf32>
    %cst_76 = arith.constant 1.000000e-16 : f32
    %160 = vector.broadcast %cst_76 : f32 to vector<16x1xf32>
    %161 = arith.addf %159, %160 : vector<16x1xf32>
    %162 = math.rsqrt %161 : vector<16x1xf32>
    %cst_77 = arith.constant 5.000000e+00 : f32
    %163 = vector.broadcast %cst_77 : f32 to vector<16x1xf32>
    %164 = arith.mulf %163, %162 : vector<16x1xf32>
    %cst_78 = arith.constant 1.000000e+00 : f32
    %165 = vector.broadcast %cst_78 : f32 to vector<16x1xf32>
    %166 = arith.minimumf %164, %165 : vector<16x1xf32>
    %167 = vector.broadcast %166 : vector<16x1xf32> to vector<16x64xf32>
    %168 = arith.mulf %156, %167 : vector<16x64xf32>
    %169 = arith.addf %107, %168 : vector<16x64xf32>
    %170 = arith.index_cast %c2_i32 : i32 to index
    %c0_79 = arith.constant 0 : index
    %c0_80 = arith.constant 0 : index
    %171 = vector.load %arg17[%170, %c0_79, %c0_80] : memref<8x16x64xf32, #tpu.memory_space<vmem>>, vector<1x16x64xf32>
    %172 = vector.shape_cast %171 : vector<1x16x64xf32> to vector<16x64xf32>
    %173 = vector.shape_cast %169 : vector<16x64xf32> to vector<1x16x64xf32>
    tpu.vector_store %arg17[%170, %c0_79, %c0_80], %173 {strides = array<i32>} : memref<8x16x64xf32, #tpu.memory_space<vmem>>, vector<1x16x64xf32>,
    %c3_i32 = arith.constant 3 : i32
    %cst_81 = arith.constant dense<0.000000e+00> : vector<16x64xf32>
    %174 = tpu.matmul %169, %9, %cst_81 {dimension_numbers = #tpu.dot_dimension_numbers<[1], [0], [0], [1], [0, 0, 1, 1], [], []>} : vector<16x64xf32>, vector<64x64xf32>, vector<16x64xf32> -> vector<16x64xf32>
    %cst_82 = arith.constant dense<0.000000e+00> : vector<16x32xf32>
    %175 = tpu.matmul %169, %1, %cst_82 {dimension_numbers = #tpu.dot_dimension_numbers<[1], [0], [0], [1], [0, 0, 1, 1], [], []>} : vector<16x64xf32>, vector<64x32xf32>, vector<16x32xf32> -> vector<16x32xf32>
    %176 = vector.broadcast %2 : vector<1x32xf32> to vector<16x32xf32>
    %177 = arith.addf %175, %176 : vector<16x32xf32>
    %cst_83 = arith.constant dense<0.000000e+00> : vector<16xf32>
    %178 = vector.multi_reduction <add>, %177, %cst_83 [1] : vector<16x32xf32> to vector<16xf32>
    %179 = vector.shape_cast %178 : vector<16xf32> to vector<16x1xf32>
    %cst_84 = arith.constant 3.200000e+01 : f32
    %180 = vector.broadcast %cst_84 : f32 to vector<16x1xf32>
    %181 = arith.divf %179, %180 : vector<16x1xf32>
    %182 = arith.mulf %177, %177 : vector<16x32xf32>
    %cst_85 = arith.constant dense<0.000000e+00> : vector<16xf32>
    %183 = vector.multi_reduction <add>, %182, %cst_85 [1] : vector<16x32xf32> to vector<16xf32>
    %184 = vector.shape_cast %183 : vector<16xf32> to vector<16x1xf32>
    %cst_86 = arith.constant 3.200000e+01 : f32
    %185 = vector.broadcast %cst_86 : f32 to vector<16x1xf32>
    %186 = arith.divf %184, %185 : vector<16x1xf32>
    %187 = arith.mulf %181, %181 : vector<16x1xf32>
    %188 = arith.subf %186, %187 : vector<16x1xf32>
    %189 = vector.broadcast %181 : vector<16x1xf32> to vector<16x32xf32>
    %190 = arith.subf %177, %189 : vector<16x32xf32>
    %cst_87 = arith.constant 9.99999974E-6 : f32
    %191 = vector.broadcast %cst_87 : f32 to vector<16x1xf32>
    %192 = arith.addf %188, %191 : vector<16x1xf32>
    %193 = math.rsqrt %192 : vector<16x1xf32>
    %194 = vector.broadcast %193 : vector<16x1xf32> to vector<16x32xf32>
    %195 = arith.mulf %190, %194 : vector<16x32xf32>
    %196 = vector.broadcast %3 : vector<1x32xf32> to vector<16x32xf32>
    %197 = arith.mulf %195, %196 : vector<16x32xf32>
    %198 = vector.broadcast %4 : vector<1x32xf32> to vector<16x32xf32>
    %199 = arith.addf %197, %198 : vector<16x32xf32>
    %cst_88 = arith.constant 0.000000e+00 : f32
    %200 = vector.broadcast %cst_88 : f32 to vector<16x32xf32>
    %201 = arith.maximumf %199, %200 : vector<16x32xf32>
    %cst_89 = arith.constant dense<0.000000e+00> : vector<16x32xf32>
    %202 = tpu.matmul %201, %5, %cst_89 {dimension_numbers = #tpu.dot_dimension_numbers<[1], [0], [0], [1], [0, 0, 1, 1], [], []>} : vector<16x32xf32>, vector<32x32xf32>, vector<16x32xf32> -> vector<16x32xf32>
    %203 = vector.broadcast %6 : vector<1x32xf32> to vector<16x32xf32>
    %204 = arith.addf %202, %203 : vector<16x32xf32>
    %205 = arith.mulf %204, %204 : vector<16x32xf32>
    %cst_90 = arith.constant dense<0.000000e+00> : vector<16xf32>
    %206 = vector.multi_reduction <add>, %205, %cst_90 [1] : vector<16x32xf32> to vector<16xf32>
    %207 = vector.shape_cast %206 : vector<16xf32> to vector<16x1xf32>
    %cst_91 = arith.constant 1.000000e-24 : f32
    %208 = vector.broadcast %cst_91 : f32 to vector<16x1xf32>
    %209 = arith.maximumf %207, %208 : vector<16x1xf32>
    %210 = math.rsqrt %209 : vector<16x1xf32>
    %211 = vector.broadcast %210 : vector<16x1xf32> to vector<16x32xf32>
    %212 = arith.mulf %204, %211 : vector<16x32xf32>
    %cst_92 = arith.constant dense<0.000000e+00> : vector<16x32xf32>
    %213 = tpu.matmul %0, %212, %cst_92 {dimension_numbers = #tpu.dot_dimension_numbers<[1], [0], [0], [1], [0, 0, 1, 1], [], []>} : vector<16x16xf32>, vector<16x32xf32>, vector<16x32xf32> -> vector<16x32xf32>
    %cst_93 = arith.constant dense<0.000000e+00> : vector<16x64xf32>
    %214 = tpu.matmul %213, %7, %cst_93 {dimension_numbers = #tpu.dot_dimension_numbers<[1], [0], [0], [1], [0, 0, 1, 1], [], []>} : vector<16x32xf32>, vector<32x64xf32>, vector<16x64xf32> -> vector<16x64xf32>
    %215 = arith.addf %214, %174 : vector<16x64xf32>
    %216 = vector.broadcast %8 : vector<1x64xf32> to vector<16x64xf32>
    %217 = arith.addf %215, %216 : vector<16x64xf32>
    %218 = math.tanh %217 : vector<16x64xf32>
    %219 = arith.mulf %218, %218 : vector<16x64xf32>
    %cst_94 = arith.constant dense<0.000000e+00> : vector<16xf32>
    %220 = vector.multi_reduction <add>, %219, %cst_94 [1] : vector<16x64xf32> to vector<16xf32>
    %221 = vector.shape_cast %220 : vector<16xf32> to vector<16x1xf32>
    %cst_95 = arith.constant 1.000000e-16 : f32
    %222 = vector.broadcast %cst_95 : f32 to vector<16x1xf32>
    %223 = arith.addf %221, %222 : vector<16x1xf32>
    %224 = math.rsqrt %223 : vector<16x1xf32>
    %cst_96 = arith.constant 5.000000e+00 : f32
    %225 = vector.broadcast %cst_96 : f32 to vector<16x1xf32>
    %226 = arith.mulf %225, %224 : vector<16x1xf32>
    %cst_97 = arith.constant 1.000000e+00 : f32
    %227 = vector.broadcast %cst_97 : f32 to vector<16x1xf32>
    %228 = arith.minimumf %226, %227 : vector<16x1xf32>
    %229 = vector.broadcast %228 : vector<16x1xf32> to vector<16x64xf32>
    %230 = arith.mulf %218, %229 : vector<16x64xf32>
    %231 = arith.addf %169, %230 : vector<16x64xf32>
    %232 = arith.index_cast %c3_i32 : i32 to index
    %c0_98 = arith.constant 0 : index
    %c0_99 = arith.constant 0 : index
    %233 = vector.load %arg17[%232, %c0_98, %c0_99] : memref<8x16x64xf32, #tpu.memory_space<vmem>>, vector<1x16x64xf32>
    %234 = vector.shape_cast %233 : vector<1x16x64xf32> to vector<16x64xf32>
    %235 = vector.shape_cast %231 : vector<16x64xf32> to vector<1x16x64xf32>
    tpu.vector_store %arg17[%232, %c0_98, %c0_99], %235 {strides = array<i32>} : memref<8x16x64xf32, #tpu.memory_space<vmem>>, vector<1x16x64xf32>,
    %c4_i32 = arith.constant 4 : i32
    %cst_100 = arith.constant dense<0.000000e+00> : vector<16x64xf32>
    %236 = tpu.matmul %231, %9, %cst_100 {dimension_numbers = #tpu.dot_dimension_numbers<[1], [0], [0], [1], [0, 0, 1, 1], [], []>} : vector<16x64xf32>, vector<64x64xf32>, vector<16x64xf32> -> vector<16x64xf32>
    %cst_101 = arith.constant dense<0.000000e+00> : vector<16x32xf32>
    %237 = tpu.matmul %231, %1, %cst_101 {dimension_numbers = #tpu.dot_dimension_numbers<[1], [0], [0], [1], [0, 0, 1, 1], [], []>} : vector<16x64xf32>, vector<64x32xf32>, vector<16x32xf32> -> vector<16x32xf32>
    %238 = vector.broadcast %2 : vector<1x32xf32> to vector<16x32xf32>
    %239 = arith.addf %237, %238 : vector<16x32xf32>
    %cst_102 = arith.constant dense<0.000000e+00> : vector<16xf32>
    %240 = vector.multi_reduction <add>, %239, %cst_102 [1] : vector<16x32xf32> to vector<16xf32>
    %241 = vector.shape_cast %240 : vector<16xf32> to vector<16x1xf32>
    %cst_103 = arith.constant 3.200000e+01 : f32
    %242 = vector.broadcast %cst_103 : f32 to vector<16x1xf32>
    %243 = arith.divf %241, %242 : vector<16x1xf32>
    %244 = arith.mulf %239, %239 : vector<16x32xf32>
    %cst_104 = arith.constant dense<0.000000e+00> : vector<16xf32>
    %245 = vector.multi_reduction <add>, %244, %cst_104 [1] : vector<16x32xf32> to vector<16xf32>
    %246 = vector.shape_cast %245 : vector<16xf32> to vector<16x1xf32>
    %cst_105 = arith.constant 3.200000e+01 : f32
    %247 = vector.broadcast %cst_105 : f32 to vector<16x1xf32>
    %248 = arith.divf %246, %247 : vector<16x1xf32>
    %249 = arith.mulf %243, %243 : vector<16x1xf32>
    %250 = arith.subf %248, %249 : vector<16x1xf32>
    %251 = vector.broadcast %243 : vector<16x1xf32> to vector<16x32xf32>
    %252 = arith.subf %239, %251 : vector<16x32xf32>
    %cst_106 = arith.constant 9.99999974E-6 : f32
    %253 = vector.broadcast %cst_106 : f32 to vector<16x1xf32>
    %254 = arith.addf %250, %253 : vector<16x1xf32>
    %255 = math.rsqrt %254 : vector<16x1xf32>
    %256 = vector.broadcast %255 : vector<16x1xf32> to vector<16x32xf32>
    %257 = arith.mulf %252, %256 : vector<16x32xf32>
    %258 = vector.broadcast %3 : vector<1x32xf32> to vector<16x32xf32>
    %259 = arith.mulf %257, %258 : vector<16x32xf32>
    %260 = vector.broadcast %4 : vector<1x32xf32> to vector<16x32xf32>
    %261 = arith.addf %259, %260 : vector<16x32xf32>
    %cst_107 = arith.constant 0.000000e+00 : f32
    %262 = vector.broadcast %cst_107 : f32 to vector<16x32xf32>
    %263 = arith.maximumf %261, %262 : vector<16x32xf32>
    %cst_108 = arith.constant dense<0.000000e+00> : vector<16x32xf32>
    %264 = tpu.matmul %263, %5, %cst_108 {dimension_numbers = #tpu.dot_dimension_numbers<[1], [0], [0], [1], [0, 0, 1, 1], [], []>} : vector<16x32xf32>, vector<32x32xf32>, vector<16x32xf32> -> vector<16x32xf32>
    %265 = vector.broadcast %6 : vector<1x32xf32> to vector<16x32xf32>
    %266 = arith.addf %264, %265 : vector<16x32xf32>
    %267 = arith.mulf %266, %266 : vector<16x32xf32>
    %cst_109 = arith.constant dense<0.000000e+00> : vector<16xf32>
    %268 = vector.multi_reduction <add>, %267, %cst_109 [1] : vector<16x32xf32> to vector<16xf32>
    %269 = vector.shape_cast %268 : vector<16xf32> to vector<16x1xf32>
    %cst_110 = arith.constant 1.000000e-24 : f32
    %270 = vector.broadcast %cst_110 : f32 to vector<16x1xf32>
    %271 = arith.maximumf %269, %270 : vector<16x1xf32>
    %272 = math.rsqrt %271 : vector<16x1xf32>
    %273 = vector.broadcast %272 : vector<16x1xf32> to vector<16x32xf32>
    %274 = arith.mulf %266, %273 : vector<16x32xf32>
    %cst_111 = arith.constant dense<0.000000e+00> : vector<16x32xf32>
    %275 = tpu.matmul %0, %274, %cst_111 {dimension_numbers = #tpu.dot_dimension_numbers<[1], [0], [0], [1], [0, 0, 1, 1], [], []>} : vector<16x16xf32>, vector<16x32xf32>, vector<16x32xf32> -> vector<16x32xf32>
    %cst_112 = arith.constant dense<0.000000e+00> : vector<16x64xf32>
    %276 = tpu.matmul %275, %7, %cst_112 {dimension_numbers = #tpu.dot_dimension_numbers<[1], [0], [0], [1], [0, 0, 1, 1], [], []>} : vector<16x32xf32>, vector<32x64xf32>, vector<16x64xf32> -> vector<16x64xf32>
    %277 = arith.addf %276, %236 : vector<16x64xf32>
    %278 = vector.broadcast %8 : vector<1x64xf32> to vector<16x64xf32>
    %279 = arith.addf %277, %278 : vector<16x64xf32>
    %280 = math.tanh %279 : vector<16x64xf32>
    %281 = arith.mulf %280, %280 : vector<16x64xf32>
    %cst_113 = arith.constant dense<0.000000e+00> : vector<16xf32>
    %282 = vector.multi_reduction <add>, %281, %cst_113 [1] : vector<16x64xf32> to vector<16xf32>
    %283 = vector.shape_cast %282 : vector<16xf32> to vector<16x1xf32>
    %cst_114 = arith.constant 1.000000e-16 : f32
    %284 = vector.broadcast %cst_114 : f32 to vector<16x1xf32>
    %285 = arith.addf %283, %284 : vector<16x1xf32>
    %286 = math.rsqrt %285 : vector<16x1xf32>
    %cst_115 = arith.constant 5.000000e+00 : f32
    %287 = vector.broadcast %cst_115 : f32 to vector<16x1xf32>
    %288 = arith.mulf %287, %286 : vector<16x1xf32>
    %cst_116 = arith.constant 1.000000e+00 : f32
    %289 = vector.broadcast %cst_116 : f32 to vector<16x1xf32>
    %290 = arith.minimumf %288, %289 : vector<16x1xf32>
    %291 = vector.broadcast %290 : vector<16x1xf32> to vector<16x64xf32>
    %292 = arith.mulf %280, %291 : vector<16x64xf32>
    %293 = arith.addf %231, %292 : vector<16x64xf32>
    %294 = arith.index_cast %c4_i32 : i32 to index
    %c0_117 = arith.constant 0 : index
    %c0_118 = arith.constant 0 : index
    %295 = vector.load %arg17[%294, %c0_117, %c0_118] : memref<8x16x64xf32, #tpu.memory_space<vmem>>, vector<1x16x64xf32>
    %296 = vector.shape_cast %295 : vector<1x16x64xf32> to vector<16x64xf32>
    %297 = vector.shape_cast %293 : vector<16x64xf32> to vector<1x16x64xf32>
    tpu.vector_store %arg17[%294, %c0_117, %c0_118], %297 {strides = array<i32>} : memref<8x16x64xf32, #tpu.memory_space<vmem>>, vector<1x16x64xf32>,
    %c5_i32 = arith.constant 5 : i32
    %cst_119 = arith.constant dense<0.000000e+00> : vector<16x64xf32>
    %298 = tpu.matmul %293, %9, %cst_119 {dimension_numbers = #tpu.dot_dimension_numbers<[1], [0], [0], [1], [0, 0, 1, 1], [], []>} : vector<16x64xf32>, vector<64x64xf32>, vector<16x64xf32> -> vector<16x64xf32>
    %cst_120 = arith.constant dense<0.000000e+00> : vector<16x32xf32>
    %299 = tpu.matmul %293, %1, %cst_120 {dimension_numbers = #tpu.dot_dimension_numbers<[1], [0], [0], [1], [0, 0, 1, 1], [], []>} : vector<16x64xf32>, vector<64x32xf32>, vector<16x32xf32> -> vector<16x32xf32>
    %300 = vector.broadcast %2 : vector<1x32xf32> to vector<16x32xf32>
    %301 = arith.addf %299, %300 : vector<16x32xf32>
    %cst_121 = arith.constant dense<0.000000e+00> : vector<16xf32>
    %302 = vector.multi_reduction <add>, %301, %cst_121 [1] : vector<16x32xf32> to vector<16xf32>
    %303 = vector.shape_cast %302 : vector<16xf32> to vector<16x1xf32>
    %cst_122 = arith.constant 3.200000e+01 : f32
    %304 = vector.broadcast %cst_122 : f32 to vector<16x1xf32>
    %305 = arith.divf %303, %304 : vector<16x1xf32>
    %306 = arith.mulf %301, %301 : vector<16x32xf32>
    %cst_123 = arith.constant dense<0.000000e+00> : vector<16xf32>
    %307 = vector.multi_reduction <add>, %306, %cst_123 [1] : vector<16x32xf32> to vector<16xf32>
    %308 = vector.shape_cast %307 : vector<16xf32> to vector<16x1xf32>
    %cst_124 = arith.constant 3.200000e+01 : f32
    %309 = vector.broadcast %cst_124 : f32 to vector<16x1xf32>
    %310 = arith.divf %308, %309 : vector<16x1xf32>
    %311 = arith.mulf %305, %305 : vector<16x1xf32>
    %312 = arith.subf %310, %311 : vector<16x1xf32>
    %313 = vector.broadcast %305 : vector<16x1xf32> to vector<16x32xf32>
    %314 = arith.subf %301, %313 : vector<16x32xf32>
    %cst_125 = arith.constant 9.99999974E-6 : f32
    %315 = vector.broadcast %cst_125 : f32 to vector<16x1xf32>
    %316 = arith.addf %312, %315 : vector<16x1xf32>
    %317 = math.rsqrt %316 : vector<16x1xf32>
    %318 = vector.broadcast %317 : vector<16x1xf32> to vector<16x32xf32>
    %319 = arith.mulf %314, %318 : vector<16x32xf32>
    %320 = vector.broadcast %3 : vector<1x32xf32> to vector<16x32xf32>
    %321 = arith.mulf %319, %320 : vector<16x32xf32>
    %322 = vector.broadcast %4 : vector<1x32xf32> to vector<16x32xf32>
    %323 = arith.addf %321, %322 : vector<16x32xf32>
    %cst_126 = arith.constant 0.000000e+00 : f32
    %324 = vector.broadcast %cst_126 : f32 to vector<16x32xf32>
    %325 = arith.maximumf %323, %324 : vector<16x32xf32>
    %cst_127 = arith.constant dense<0.000000e+00> : vector<16x32xf32>
    %326 = tpu.matmul %325, %5, %cst_127 {dimension_numbers = #tpu.dot_dimension_numbers<[1], [0], [0], [1], [0, 0, 1, 1], [], []>} : vector<16x32xf32>, vector<32x32xf32>, vector<16x32xf32> -> vector<16x32xf32>
    %327 = vector.broadcast %6 : vector<1x32xf32> to vector<16x32xf32>
    %328 = arith.addf %326, %327 : vector<16x32xf32>
    %329 = arith.mulf %328, %328 : vector<16x32xf32>
    %cst_128 = arith.constant dense<0.000000e+00> : vector<16xf32>
    %330 = vector.multi_reduction <add>, %329, %cst_128 [1] : vector<16x32xf32> to vector<16xf32>
    %331 = vector.shape_cast %330 : vector<16xf32> to vector<16x1xf32>
    %cst_129 = arith.constant 1.000000e-24 : f32
    %332 = vector.broadcast %cst_129 : f32 to vector<16x1xf32>
    %333 = arith.maximumf %331, %332 : vector<16x1xf32>
    %334 = math.rsqrt %333 : vector<16x1xf32>
    %335 = vector.broadcast %334 : vector<16x1xf32> to vector<16x32xf32>
    %336 = arith.mulf %328, %335 : vector<16x32xf32>
    %cst_130 = arith.constant dense<0.000000e+00> : vector<16x32xf32>
    %337 = tpu.matmul %0, %336, %cst_130 {dimension_numbers = #tpu.dot_dimension_numbers<[1], [0], [0], [1], [0, 0, 1, 1], [], []>} : vector<16x16xf32>, vector<16x32xf32>, vector<16x32xf32> -> vector<16x32xf32>
    %cst_131 = arith.constant dense<0.000000e+00> : vector<16x64xf32>
    %338 = tpu.matmul %337, %7, %cst_131 {dimension_numbers = #tpu.dot_dimension_numbers<[1], [0], [0], [1], [0, 0, 1, 1], [], []>} : vector<16x32xf32>, vector<32x64xf32>, vector<16x64xf32> -> vector<16x64xf32>
    %339 = arith.addf %338, %298 : vector<16x64xf32>
    %340 = vector.broadcast %8 : vector<1x64xf32> to vector<16x64xf32>
    %341 = arith.addf %339, %340 : vector<16x64xf32>
    %342 = math.tanh %341 : vector<16x64xf32>
    %343 = arith.mulf %342, %342 : vector<16x64xf32>
    %cst_132 = arith.constant dense<0.000000e+00> : vector<16xf32>
    %344 = vector.multi_reduction <add>, %343, %cst_132 [1] : vector<16x64xf32> to vector<16xf32>
    %345 = vector.shape_cast %344 : vector<16xf32> to vector<16x1xf32>
    %cst_133 = arith.constant 1.000000e-16 : f32
    %346 = vector.broadcast %cst_133 : f32 to vector<16x1xf32>
    %347 = arith.addf %345, %346 : vector<16x1xf32>
    %348 = math.rsqrt %347 : vector<16x1xf32>
    %cst_134 = arith.constant 5.000000e+00 : f32
    %349 = vector.broadcast %cst_134 : f32 to vector<16x1xf32>
    %350 = arith.mulf %349, %348 : vector<16x1xf32>
    %cst_135 = arith.constant 1.000000e+00 : f32
    %351 = vector.broadcast %cst_135 : f32 to vector<16x1xf32>
    %352 = arith.minimumf %350, %351 : vector<16x1xf32>
    %353 = vector.broadcast %352 : vector<16x1xf32> to vector<16x64xf32>
    %354 = arith.mulf %342, %353 : vector<16x64xf32>
    %355 = arith.addf %293, %354 : vector<16x64xf32>
    %356 = arith.index_cast %c5_i32 : i32 to index
    %c0_136 = arith.constant 0 : index
    %c0_137 = arith.constant 0 : index
    %357 = vector.load %arg17[%356, %c0_136, %c0_137] : memref<8x16x64xf32, #tpu.memory_space<vmem>>, vector<1x16x64xf32>
    %358 = vector.shape_cast %357 : vector<1x16x64xf32> to vector<16x64xf32>
    %359 = vector.shape_cast %355 : vector<16x64xf32> to vector<1x16x64xf32>
    tpu.vector_store %arg17[%356, %c0_136, %c0_137], %359 {strides = array<i32>} : memref<8x16x64xf32, #tpu.memory_space<vmem>>, vector<1x16x64xf32>,
    %c6_i32 = arith.constant 6 : i32
    %cst_138 = arith.constant dense<0.000000e+00> : vector<16x64xf32>
    %360 = tpu.matmul %355, %9, %cst_138 {dimension_numbers = #tpu.dot_dimension_numbers<[1], [0], [0], [1], [0, 0, 1, 1], [], []>} : vector<16x64xf32>, vector<64x64xf32>, vector<16x64xf32> -> vector<16x64xf32>
    %cst_139 = arith.constant dense<0.000000e+00> : vector<16x32xf32>
    %361 = tpu.matmul %355, %1, %cst_139 {dimension_numbers = #tpu.dot_dimension_numbers<[1], [0], [0], [1], [0, 0, 1, 1], [], []>} : vector<16x64xf32>, vector<64x32xf32>, vector<16x32xf32> -> vector<16x32xf32>
    %362 = vector.broadcast %2 : vector<1x32xf32> to vector<16x32xf32>
    %363 = arith.addf %361, %362 : vector<16x32xf32>
    %cst_140 = arith.constant dense<0.000000e+00> : vector<16xf32>
    %364 = vector.multi_reduction <add>, %363, %cst_140 [1] : vector<16x32xf32> to vector<16xf32>
    %365 = vector.shape_cast %364 : vector<16xf32> to vector<16x1xf32>
    %cst_141 = arith.constant 3.200000e+01 : f32
    %366 = vector.broadcast %cst_141 : f32 to vector<16x1xf32>
    %367 = arith.divf %365, %366 : vector<16x1xf32>
    %368 = arith.mulf %363, %363 : vector<16x32xf32>
    %cst_142 = arith.constant dense<0.000000e+00> : vector<16xf32>
    %369 = vector.multi_reduction <add>, %368, %cst_142 [1] : vector<16x32xf32> to vector<16xf32>
    %370 = vector.shape_cast %369 : vector<16xf32> to vector<16x1xf32>
    %cst_143 = arith.constant 3.200000e+01 : f32
    %371 = vector.broadcast %cst_143 : f32 to vector<16x1xf32>
    %372 = arith.divf %370, %371 : vector<16x1xf32>
    %373 = arith.mulf %367, %367 : vector<16x1xf32>
    %374 = arith.subf %372, %373 : vector<16x1xf32>
    %375 = vector.broadcast %367 : vector<16x1xf32> to vector<16x32xf32>
    %376 = arith.subf %363, %375 : vector<16x32xf32>
    %cst_144 = arith.constant 9.99999974E-6 : f32
    %377 = vector.broadcast %cst_144 : f32 to vector<16x1xf32>
    %378 = arith.addf %374, %377 : vector<16x1xf32>
    %379 = math.rsqrt %378 : vector<16x1xf32>
    %380 = vector.broadcast %379 : vector<16x1xf32> to vector<16x32xf32>
    %381 = arith.mulf %376, %380 : vector<16x32xf32>
    %382 = vector.broadcast %3 : vector<1x32xf32> to vector<16x32xf32>
    %383 = arith.mulf %381, %382 : vector<16x32xf32>
    %384 = vector.broadcast %4 : vector<1x32xf32> to vector<16x32xf32>
    %385 = arith.addf %383, %384 : vector<16x32xf32>
    %cst_145 = arith.constant 0.000000e+00 : f32
    %386 = vector.broadcast %cst_145 : f32 to vector<16x32xf32>
    %387 = arith.maximumf %385, %386 : vector<16x32xf32>
    %cst_146 = arith.constant dense<0.000000e+00> : vector<16x32xf32>
    %388 = tpu.matmul %387, %5, %cst_146 {dimension_numbers = #tpu.dot_dimension_numbers<[1], [0], [0], [1], [0, 0, 1, 1], [], []>} : vector<16x32xf32>, vector<32x32xf32>, vector<16x32xf32> -> vector<16x32xf32>
    %389 = vector.broadcast %6 : vector<1x32xf32> to vector<16x32xf32>
    %390 = arith.addf %388, %389 : vector<16x32xf32>
    %391 = arith.mulf %390, %390 : vector<16x32xf32>
    %cst_147 = arith.constant dense<0.000000e+00> : vector<16xf32>
    %392 = vector.multi_reduction <add>, %391, %cst_147 [1] : vector<16x32xf32> to vector<16xf32>
    %393 = vector.shape_cast %392 : vector<16xf32> to vector<16x1xf32>
    %cst_148 = arith.constant 1.000000e-24 : f32
    %394 = vector.broadcast %cst_148 : f32 to vector<16x1xf32>
    %395 = arith.maximumf %393, %394 : vector<16x1xf32>
    %396 = math.rsqrt %395 : vector<16x1xf32>
    %397 = vector.broadcast %396 : vector<16x1xf32> to vector<16x32xf32>
    %398 = arith.mulf %390, %397 : vector<16x32xf32>
    %cst_149 = arith.constant dense<0.000000e+00> : vector<16x32xf32>
    %399 = tpu.matmul %0, %398, %cst_149 {dimension_numbers = #tpu.dot_dimension_numbers<[1], [0], [0], [1], [0, 0, 1, 1], [], []>} : vector<16x16xf32>, vector<16x32xf32>, vector<16x32xf32> -> vector<16x32xf32>
    %cst_150 = arith.constant dense<0.000000e+00> : vector<16x64xf32>
    %400 = tpu.matmul %399, %7, %cst_150 {dimension_numbers = #tpu.dot_dimension_numbers<[1], [0], [0], [1], [0, 0, 1, 1], [], []>} : vector<16x32xf32>, vector<32x64xf32>, vector<16x64xf32> -> vector<16x64xf32>
    %401 = arith.addf %400, %360 : vector<16x64xf32>
    %402 = vector.broadcast %8 : vector<1x64xf32> to vector<16x64xf32>
    %403 = arith.addf %401, %402 : vector<16x64xf32>
    %404 = math.tanh %403 : vector<16x64xf32>
    %405 = arith.mulf %404, %404 : vector<16x64xf32>
    %cst_151 = arith.constant dense<0.000000e+00> : vector<16xf32>
    %406 = vector.multi_reduction <add>, %405, %cst_151 [1] : vector<16x64xf32> to vector<16xf32>
    %407 = vector.shape_cast %406 : vector<16xf32> to vector<16x1xf32>
    %cst_152 = arith.constant 1.000000e-16 : f32
    %408 = vector.broadcast %cst_152 : f32 to vector<16x1xf32>
    %409 = arith.addf %407, %408 : vector<16x1xf32>
    %410 = math.rsqrt %409 : vector<16x1xf32>
    %cst_153 = arith.constant 5.000000e+00 : f32
    %411 = vector.broadcast %cst_153 : f32 to vector<16x1xf32>
    %412 = arith.mulf %411, %410 : vector<16x1xf32>
    %cst_154 = arith.constant 1.000000e+00 : f32
    %413 = vector.broadcast %cst_154 : f32 to vector<16x1xf32>
    %414 = arith.minimumf %412, %413 : vector<16x1xf32>
    %415 = vector.broadcast %414 : vector<16x1xf32> to vector<16x64xf32>
    %416 = arith.mulf %404, %415 : vector<16x64xf32>
    %417 = arith.addf %355, %416 : vector<16x64xf32>
    %418 = arith.index_cast %c6_i32 : i32 to index
    %c0_155 = arith.constant 0 : index
    %c0_156 = arith.constant 0 : index
    %419 = vector.load %arg17[%418, %c0_155, %c0_156] : memref<8x16x64xf32, #tpu.memory_space<vmem>>, vector<1x16x64xf32>
    %420 = vector.shape_cast %419 : vector<1x16x64xf32> to vector<16x64xf32>
    %421 = vector.shape_cast %417 : vector<16x64xf32> to vector<1x16x64xf32>
    tpu.vector_store %arg17[%418, %c0_155, %c0_156], %421 {strides = array<i32>} : memref<8x16x64xf32, #tpu.memory_space<vmem>>, vector<1x16x64xf32>,
    %c7_i32 = arith.constant 7 : i32
    %cst_157 = arith.constant dense<0.000000e+00> : vector<16x64xf32>
    %422 = tpu.matmul %417, %9, %cst_157 {dimension_numbers = #tpu.dot_dimension_numbers<[1], [0], [0], [1], [0, 0, 1, 1], [], []>} : vector<16x64xf32>, vector<64x64xf32>, vector<16x64xf32> -> vector<16x64xf32>
    %cst_158 = arith.constant dense<0.000000e+00> : vector<16x32xf32>
    %423 = tpu.matmul %417, %1, %cst_158 {dimension_numbers = #tpu.dot_dimension_numbers<[1], [0], [0], [1], [0, 0, 1, 1], [], []>} : vector<16x64xf32>, vector<64x32xf32>, vector<16x32xf32> -> vector<16x32xf32>
    %424 = vector.broadcast %2 : vector<1x32xf32> to vector<16x32xf32>
    %425 = arith.addf %423, %424 : vector<16x32xf32>
    %cst_159 = arith.constant dense<0.000000e+00> : vector<16xf32>
    %426 = vector.multi_reduction <add>, %425, %cst_159 [1] : vector<16x32xf32> to vector<16xf32>
    %427 = vector.shape_cast %426 : vector<16xf32> to vector<16x1xf32>
    %cst_160 = arith.constant 3.200000e+01 : f32
    %428 = vector.broadcast %cst_160 : f32 to vector<16x1xf32>
    %429 = arith.divf %427, %428 : vector<16x1xf32>
    %430 = arith.mulf %425, %425 : vector<16x32xf32>
    %cst_161 = arith.constant dense<0.000000e+00> : vector<16xf32>
    %431 = vector.multi_reduction <add>, %430, %cst_161 [1] : vector<16x32xf32> to vector<16xf32>
    %432 = vector.shape_cast %431 : vector<16xf32> to vector<16x1xf32>
    %cst_162 = arith.constant 3.200000e+01 : f32
    %433 = vector.broadcast %cst_162 : f32 to vector<16x1xf32>
    %434 = arith.divf %432, %433 : vector<16x1xf32>
    %435 = arith.mulf %429, %429 : vector<16x1xf32>
    %436 = arith.subf %434, %435 : vector<16x1xf32>
    %437 = vector.broadcast %429 : vector<16x1xf32> to vector<16x32xf32>
    %438 = arith.subf %425, %437 : vector<16x32xf32>
    %cst_163 = arith.constant 9.99999974E-6 : f32
    %439 = vector.broadcast %cst_163 : f32 to vector<16x1xf32>
    %440 = arith.addf %436, %439 : vector<16x1xf32>
    %441 = math.rsqrt %440 : vector<16x1xf32>
    %442 = vector.broadcast %441 : vector<16x1xf32> to vector<16x32xf32>
    %443 = arith.mulf %438, %442 : vector<16x32xf32>
    %444 = vector.broadcast %3 : vector<1x32xf32> to vector<16x32xf32>
    %445 = arith.mulf %443, %444 : vector<16x32xf32>
    %446 = vector.broadcast %4 : vector<1x32xf32> to vector<16x32xf32>
    %447 = arith.addf %445, %446 : vector<16x32xf32>
    %cst_164 = arith.constant 0.000000e+00 : f32
    %448 = vector.broadcast %cst_164 : f32 to vector<16x32xf32>
    %449 = arith.maximumf %447, %448 : vector<16x32xf32>
    %cst_165 = arith.constant dense<0.000000e+00> : vector<16x32xf32>
    %450 = tpu.matmul %449, %5, %cst_165 {dimension_numbers = #tpu.dot_dimension_numbers<[1], [0], [0], [1], [0, 0, 1, 1], [], []>} : vector<16x32xf32>, vector<32x32xf32>, vector<16x32xf32> -> vector<16x32xf32>
    %451 = vector.broadcast %6 : vector<1x32xf32> to vector<16x32xf32>
    %452 = arith.addf %450, %451 : vector<16x32xf32>
    %453 = arith.mulf %452, %452 : vector<16x32xf32>
    %cst_166 = arith.constant dense<0.000000e+00> : vector<16xf32>
    %454 = vector.multi_reduction <add>, %453, %cst_166 [1] : vector<16x32xf32> to vector<16xf32>
    %455 = vector.shape_cast %454 : vector<16xf32> to vector<16x1xf32>
    %cst_167 = arith.constant 1.000000e-24 : f32
    %456 = vector.broadcast %cst_167 : f32 to vector<16x1xf32>
    %457 = arith.maximumf %455, %456 : vector<16x1xf32>
    %458 = math.rsqrt %457 : vector<16x1xf32>
    %459 = vector.broadcast %458 : vector<16x1xf32> to vector<16x32xf32>
    %460 = arith.mulf %452, %459 : vector<16x32xf32>
    %cst_168 = arith.constant dense<0.000000e+00> : vector<16x32xf32>
    %461 = tpu.matmul %0, %460, %cst_168 {dimension_numbers = #tpu.dot_dimension_numbers<[1], [0], [0], [1], [0, 0, 1, 1], [], []>} : vector<16x16xf32>, vector<16x32xf32>, vector<16x32xf32> -> vector<16x32xf32>
    %cst_169 = arith.constant dense<0.000000e+00> : vector<16x64xf32>
    %462 = tpu.matmul %461, %7, %cst_169 {dimension_numbers = #tpu.dot_dimension_numbers<[1], [0], [0], [1], [0, 0, 1, 1], [], []>} : vector<16x32xf32>, vector<32x64xf32>, vector<16x64xf32> -> vector<16x64xf32>
    %463 = arith.addf %462, %422 : vector<16x64xf32>
    %464 = vector.broadcast %8 : vector<1x64xf32> to vector<16x64xf32>
    %465 = arith.addf %463, %464 : vector<16x64xf32>
    %466 = math.tanh %465 : vector<16x64xf32>
    %467 = arith.mulf %466, %466 : vector<16x64xf32>
    %cst_170 = arith.constant dense<0.000000e+00> : vector<16xf32>
    %468 = vector.multi_reduction <add>, %467, %cst_170 [1] : vector<16x64xf32> to vector<16xf32>
    %469 = vector.shape_cast %468 : vector<16xf32> to vector<16x1xf32>
    %cst_171 = arith.constant 1.000000e-16 : f32
    %470 = vector.broadcast %cst_171 : f32 to vector<16x1xf32>
    %471 = arith.addf %469, %470 : vector<16x1xf32>
    %472 = math.rsqrt %471 : vector<16x1xf32>
    %cst_172 = arith.constant 5.000000e+00 : f32
    %473 = vector.broadcast %cst_172 : f32 to vector<16x1xf32>
    %474 = arith.mulf %473, %472 : vector<16x1xf32>
    %cst_173 = arith.constant 1.000000e+00 : f32
    %475 = vector.broadcast %cst_173 : f32 to vector<16x1xf32>
    %476 = arith.minimumf %474, %475 : vector<16x1xf32>
    %477 = vector.broadcast %476 : vector<16x1xf32> to vector<16x64xf32>
    %478 = arith.mulf %466, %477 : vector<16x64xf32>
    %479 = arith.addf %417, %478 : vector<16x64xf32>
    %480 = arith.index_cast %c7_i32 : i32 to index
    %c0_174 = arith.constant 0 : index
    %c0_175 = arith.constant 0 : index
    %481 = vector.load %arg17[%480, %c0_174, %c0_175] : memref<8x16x64xf32, #tpu.memory_space<vmem>>, vector<1x16x64xf32>
    %482 = vector.shape_cast %481 : vector<1x16x64xf32> to vector<16x64xf32>
    %483 = vector.shape_cast %479 : vector<16x64xf32> to vector<1x16x64xf32>
    tpu.vector_store %arg17[%480, %c0_174, %c0_175], %483 {strides = array<i32>} : memref<8x16x64xf32, #tpu.memory_space<vmem>>, vector<1x16x64xf32>,
    %c7_i32_176 = arith.constant 7 : i32
    return
  }
}

</mosaic_0001>

<bundles_post_ra>
// kernel: tpu_custom_call.1
= control target key start
LH: loop header
LB: loop body
LE: loop exit
PB: predicated region body
PF: predicated region fallthrough
CT: control target
= control target key end

     0   :  { %s6236_s0 = inlined_call_operand.vmem [shape: f32[16,4], index: 0, kind: input, shape index: {}]   ;;  %s6237_s1 = inlined_call_operand.hbm [shape: f32[16,16], index: 1, kind: input, shape index: {}]   ;;  %s6238_s2 = inlined_call_operand.hbm [shape: f32[4,32], index: 2, kind: input, shape index: {}]   ;;  %s6239_s3 = inlined_call_operand.vmem [shape: f32[1,32], index: 3, kind: input, shape index: {}]   ;;  %s6240_s4 = inlined_call_operand.hbm [shape: f32[1,32], index: 4, kind: input, shape index: {}]   ;;  %s6241_s5 = inlined_call_operand.hbm [shape: f32[1,32], index: 5, kind: input, shape index: {}]   ;;  %s6242_s6 = inlined_call_operand.vmem [shape: f32[32,64], index: 6, kind: input, shape index: {}]   ;;  %s6243_s7 = inlined_call_operand.hbm [shape: f32[1,64], index: 7, kind: input, shape index: {}]   ;;  %s6244_s8 = inlined_call_operand.vmem [shape: f32[64,32], index: 8, kind: input, shape index: {}]   ;;  %s6245_s9 = inlined_call_operand.hbm [shape: f32[1,32], index: 9, kind: input, shape index: {}]   ;;  %s6246_s10 = inlined_call_operand.hbm [shape: f32[1,32], index: 10, kind: input, shape index: {}]   ;;  %s6247_s11 = inlined_call_operand.hbm [shape: f32[1,32], index: 11, kind: input, shape index: {}]   ;;  %s6248_s12 = inlined_call_operand.vmem [shape: f32[32,32], index: 12, kind: input, shape index: {}]   ;;  %s6249_s13 = inlined_call_operand.vmem [shape: f32[1,32], index: 13, kind: input, shape index: {}]   ;;  %s6250_s14 = inlined_call_operand.hbm [shape: f32[32,64], index: 14, kind: input, shape index: {}]   ;;  %s6251_s15 = inlined_call_operand.vmem [shape: f32[1,64], index: 15, kind: input, shape index: {}]   ;;  %s6252_s16 = inlined_call_operand.vmem [shape: f32[64,64], index: 16, kind: input, shape index: {}]   ;;  %s6253_s17 = inlined_call_operand.hbm [shape: f32[8,16,64], index: 17, kind: output, shape index: {}]  }
   0x1   :  { %6256 = sst [smem:[#allocation24_spill]] %s6236_s0 }
   0x2   :  { %6257 = sst [smem:[#allocation25_spill]] %s6237_s1 }
   0x3   :  { %22 = vsyncpa [#allocation3], 0 }
   0x4   :  { %23 = vsyncpa [#allocation6], 0 }
   0x5   :  { %24 = vsyncpa [#allocation9], 0 }
   0x6   :  { %25 = vsyncpa [#allocation12], 0 }
   0x7   :  { %26 = vsyncpa [#allocation15], 0 }
   0x8   :  { %27 = vsyncpa [#allocation4], 0  ;;  %s5370_s24 = smov [#allocation5]   ;;  %s5371_s26 = smov [#allocation8]  }
   0x9   :  { %s48_s25 = sshll.u32 %s5370_s24, 4  ;;  %s70_s27 = sshll.u32 %s5371_s26, 4  ;;  %s49_s25 = int_to_ptr.vmem [resolvable:$true] %s48_s25  ;;  %s71_s27 = int_to_ptr.vmem [resolvable:$true] %s70_s27 }
   0xa   :  { %s5138_s0 = scalar_lea.hbm %s6238_s2, 64 }
   0xb   :  { %p5139_p0 = scmp.ne.s32.totalorder %s6238_s2, %s5138_s0  ;;  %p5142_p1 = scmp.lt.u32.totalorder %s5138_s0, %s6238_s2 }
   0xd   :  { %p5144_p2 = pnand %p5142_p1, %p5139_p0 }
   0xf   :  { %5147 = shalt.err (!%p5144_p2)
}
  0x10   :  { %s5148_s20 = scalar_lea.vmem %s49_s25, 64  ;;  %p5153_p4 = scmp.lt.s32.totalorder %s49_s25, %s49_s25 }
  0x11   :  { %p5149_p3 = scmp.ne.s32.totalorder %s49_s25, %s5148_s20  ;;  %p5154_p5 = scmp.lt.s32.totalorder %s5148_s20, %s5148_s20 }
  0x13   :  { %p5155_p6 = por %p5154_p5, %p5153_p4 }
  0x15   :  { %p5156_p7 = pnand %p5155_p6, %p5149_p3 }
  0x17   :  { %5159 = shalt.err (!%p5156_p7)
}
  0x18   :  { %51 = dma.hbm_to_vmem [thread:$0]  %s6238_s2, 64, %s49_s25, [#allocation6]  }
  0x19   :  { %s5160_s26 = scalar_lea.hbm %s6241_s5, 16 }
  0x1a   :  { %p5161_p8 = scmp.ne.s32.totalorder %s6241_s5, %s5160_s26  ;;  %p5164_p9 = scmp.lt.u32.totalorder %s5160_s26, %s6241_s5 }
  0x1c   :  { %p5166_p10 = pnand %p5164_p9, %p5161_p8 }
  0x1e   :  { %5169 = shalt.err (!%p5166_p10)
}
  0x1f   :  { %s5170_s18 = scalar_lea.vmem %s71_s27, 16  ;;  %s5174_s19 = scalar_lea.vmem %s71_s27, 32 }
  0x20   :  { %p5171_p11 = scmp.ne.s32.totalorder %s71_s27, %s5170_s18  ;;  %p5175_p12 = scmp.lt.s32.totalorder %s71_s27, %s71_s27 }
  0x21   :  { %p5176_p13 = scmp.lt.s32.totalorder %s5174_s19, %s5170_s18 }
  0x23   :  { %p5177_p0 = por %p5176_p13, %p5175_p12 }
  0x25   :  { %p5178_p1 = pnand %p5177_p0, %p5171_p11 }
  0x27   :  { %5181 = shalt.err (!%p5178_p1)
}
  0x28   :  { %73 = dma.hbm_to_vmem [thread:$0]  %s6241_s5, 16, %s71_s27, [#allocation9]  }
  0x29   :  { %s5372_s1 = smov [#allocation11]   ;;  %s5373_s21 = smov [#allocation14]  }
  0x2a   :  { %s94_s20 = sshll.u32 %s5372_s1, 4  ;;  %s114_s22 = sshll.u32 %s5373_s21, 4  ;;  %s95_s20 = int_to_ptr.vmem [resolvable:$true] %s94_s20  ;;  %s115_s22 = int_to_ptr.vmem [resolvable:$true] %s114_s22 }
  0x2b   :  { %s5182_s26 = scalar_lea.hbm %s6245_s9, 16 }
  0x2c   :  { %p5183_p2 = scmp.ne.s32.totalorder %s6245_s9, %s5182_s26  ;;  %p5186_p3 = scmp.lt.u32.totalorder %s5182_s26, %s6245_s9 }
  0x2e   :  { %p5188_p4 = pnand %p5186_p3, %p5183_p2 }
  0x30   :  { %5191 = shalt.err (!%p5188_p4)
}
  0x31   :  { %s5192_s5 = scalar_lea.vmem %s95_s20, 16  ;;  %s5196_s27 = scalar_lea.vmem %s95_s20, 32 }
  0x32   :  { %p5193_p5 = scmp.ne.s32.totalorder %s95_s20, %s5192_s5  ;;  %p5197_p6 = scmp.lt.s32.totalorder %s95_s20, %s95_s20 }
  0x33   :  { %p5198_p7 = scmp.lt.s32.totalorder %s5196_s27, %s5192_s5 }
  0x35   :  { %p5199_p8 = por %p5198_p7, %p5197_p6 }
  0x37   :  { %p5200_p9 = pnand %p5199_p8, %p5193_p5 }
  0x39   :  { %5203 = shalt.err (!%p5200_p9)
}
  0x3a   :  { %97 = dma.hbm_to_vmem [thread:$0]  %s6245_s9, 16, %s95_s20, [#allocation12]  }
  0x3b   :  { %s5204_s1 = scalar_lea.hbm %s6247_s11, 16 }
  0x3c   :  { %p5205_p10 = scmp.ne.s32.totalorder %s6247_s11, %s5204_s1  ;;  %p5208_p11 = scmp.lt.u32.totalorder %s5204_s1, %s6247_s11 }
  0x3e   :  { %p5210_p12 = pnand %p5208_p11, %p5205_p10 }
  0x40   :  { %5213 = shalt.err (!%p5210_p12)
}
  0x41   :  { %s5214_s28 = scalar_lea.vmem %s115_s22, 16  ;;  %s5218_s29 = scalar_lea.vmem %s115_s22, 32 }
  0x42   :  { %p5215_p13 = scmp.ne.s32.totalorder %s115_s22, %s5214_s28  ;;  %p5219_p0 = scmp.lt.s32.totalorder %s115_s22, %s115_s22 }
  0x43   :  { %p5220_p1 = scmp.lt.s32.totalorder %s5218_s29, %s5214_s28 }
  0x45   :  { %p5221_p2 = por %p5220_p1, %p5219_p0 }
  0x47   :  { %p5222_p3 = pnand %p5221_p2, %p5215_p13 }
  0x49   :  { %5225 = shalt.err (!%p5222_p3)
}
  0x4a   :  { %117 = dma.hbm_to_vmem [thread:$0]  %s6247_s11, 16, %s115_s22, [#allocation15]  }
  0x4b   :  { %s5374_s0 = smov [#allocation2]   ;;  %s6258_s18 = sld [smem:[#allocation25_spill]] }
  0x4c   :  { %s35_s30 = sshll.u32 %s5374_s0, 4  ;;  %s36_s30 = int_to_ptr.vmem [resolvable:$true] %s35_s30 }
  0x51   :  { %s5226_s19 = scalar_lea.hbm %s6258_s18, 256 }
  0x52   :  { %p5227_p4 = scmp.ne.s32.totalorder %s6258_s18, %s5226_s19  ;;  %p5230_p5 = scmp.lt.u32.totalorder %s5226_s19, %s6258_s18 }
  0x54   :  { %p5232_p6 = pnand %p5230_p5, %p5227_p4 }
  0x56   :  { %5235 = shalt.err (!%p5232_p6)
}
  0x57   :  { %s5236_s23 = scalar_lea.vmem %s36_s30, 256  ;;  %p5241_p8 = scmp.lt.s32.totalorder %s36_s30, %s36_s30 }
  0x58   :  { %p5237_p7 = scmp.ne.s32.totalorder %s36_s30, %s5236_s23  ;;  %p5242_p9 = scmp.lt.s32.totalorder %s5236_s23, %s5236_s23 }
  0x5a   :  { %p5243_p10 = por %p5242_p9, %p5241_p8 }
  0x5c   :  { %p5244_p11 = pnand %p5243_p10, %p5237_p7 }
  0x5e   :  { %5247 = shalt.err (!%p5244_p11)
}
  0x5f   :  { %s5375_s11 = smov 128   ;;  %s5376_s22 = smov 8  }
  0x60   :  { %41 = dma.hbm_to_vmem [thread:$0]  %s6258_s18, 256, %s36_s30, [#allocation3], %s5375_s11, %s5375_s11, %s5376_s22  }
  0x61   :  { %s5377_s28 = smov [#allocation7]   ;;  %s5378_s9 = smov [#allocation10]  }
  0x62   :  { %s60_s29 = sshll.u32 %s5377_s28, 4  ;;  %s82_s20 = sshll.u32 %s5378_s9, 4  ;;  %s61_s29 = int_to_ptr.vmem [resolvable:$true] %s60_s29  ;;  %s83_s20 = int_to_ptr.vmem [resolvable:$true] %s82_s20 }
  0x63   :  { %s5248_s27 = scalar_lea.hbm %s6240_s4, 16 }
  0x64   :  { %p5249_p12 = scmp.ne.s32.totalorder %s6240_s4, %s5248_s27  ;;  %p5252_p13 = scmp.lt.u32.totalorder %s5248_s27, %s6240_s4 }
  0x66   :  { %p5254_p0 = pnand %p5252_p13, %p5249_p12 }
  0x68   :  { %5257 = shalt.err (!%p5254_p0)
}
  0x69   :  { %s5258_s30 = scalar_lea.vmem %s61_s29, 16  ;;  %s5262_s18 = scalar_lea.vmem %s61_s29, 32 }
  0x6a   :  { %p5259_p1 = scmp.ne.s32.totalorder %s61_s29, %s5258_s30  ;;  %p5263_p2 = scmp.lt.s32.totalorder %s61_s29, %s61_s29 }
  0x6b   :  { %p5264_p3 = scmp.lt.s32.totalorder %s5262_s18, %s5258_s30 }
  0x6d   :  { %p5265_p4 = por %p5264_p3, %p5263_p2 }
  0x6f   :  { %p5266_p5 = pnand %p5265_p4, %p5259_p1 }
  0x71   :  { %5269 = shalt.err (!%p5266_p5)
}
  0x72   :  { %63 = dma.hbm_to_vmem [thread:$0]  %s6240_s4, 16, %s61_s29, [#allocation6]  }
  0x73   :  { %s5270_s28 = scalar_lea.hbm %s6243_s7, 16 }
  0x74   :  { %p5271_p6 = scmp.ne.s32.totalorder %s6243_s7, %s5270_s28  ;;  %p5274_p7 = scmp.lt.u32.totalorder %s5270_s28, %s6243_s7 }
  0x76   :  { %p5276_p8 = pnand %p5274_p7, %p5271_p6 }
  0x78   :  { %5279 = shalt.err (!%p5276_p8)
}
  0x79   :  { %s5280_s19 = scalar_lea.vmem %s83_s20, 16  ;;  %s5284_s2 = scalar_lea.vmem %s83_s20, 32 }
  0x7a   :  { %p5281_p9 = scmp.ne.s32.totalorder %s83_s20, %s5280_s19  ;;  %p5285_p10 = scmp.lt.s32.totalorder %s83_s20, %s83_s20 }
  0x7b   :  { %p5286_p11 = scmp.lt.s32.totalorder %s5284_s2, %s5280_s19 }
  0x7d   :  { %p5287_p12 = por %p5286_p11, %p5285_p10 }
  0x7f   :  { %p5288_p13 = pnand %p5287_p12, %p5281_p9 }
  0x81   :  { %5291 = shalt.err (!%p5288_p13)
}
  0x82   :  { %85 = dma.hbm_to_vmem [thread:$0]  %s6243_s7, 16, %s83_s20, [#allocation9]  }
  0x83   :  { %s5379_s25 = smov [#allocation13]   ;;  %s5380_s30 = smov [#allocation16]  }
  0x84   :  { %s104_s1 = sshll.u32 %s5379_s25, 4  ;;  %s127_s18 = sshll.u32 %s5380_s30, 4  ;;  %s105_s1 = int_to_ptr.vmem [resolvable:$true] %s104_s1  ;;  %s128_s18 = int_to_ptr.vmem [resolvable:$true] %s127_s18 }
  0x85   :  { %s5292_s24 = scalar_lea.hbm %s6246_s10, 16 }
  0x86   :  { %p5293_p0 = scmp.ne.s32.totalorder %s6246_s10, %s5292_s24  ;;  %p5296_p1 = scmp.lt.u32.totalorder %s5292_s24, %s6246_s10 }
  0x88   :  { %p5298_p2 = pnand %p5296_p1, %p5293_p0 }
  0x8a   :  { %5301 = shalt.err (!%p5298_p2)
}
  0x8b   :  { %s5302_s7 = scalar_lea.vmem %s105_s1, 16  ;;  %s5306_s20 = scalar_lea.vmem %s105_s1, 32 }
  0x8c   :  { %p5303_p3 = scmp.ne.s32.totalorder %s105_s1, %s5302_s7  ;;  %p5307_p4 = scmp.lt.s32.totalorder %s105_s1, %s105_s1 }
  0x8d   :  { %p5308_p5 = scmp.lt.s32.totalorder %s5306_s20, %s5302_s7 }
  0x8f   :  { %p5309_p6 = por %p5308_p5, %p5307_p4 }
  0x91   :  { %p5310_p7 = pnand %p5309_p6, %p5303_p3 }
  0x93   :  { %5313 = shalt.err (!%p5310_p7)
}
  0x94   :  { %107 = dma.hbm_to_vmem [thread:$0]  %s6246_s10, 16, %s105_s1, [#allocation12]  }
  0x95   :  { %s5314_s4 = scalar_lea.hbm %s6250_s14, 512 }
  0x96   :  { %p5315_p8 = scmp.ne.s32.totalorder %s6250_s14, %s5314_s4  ;;  %p5318_p9 = scmp.lt.u32.totalorder %s5314_s4, %s6250_s14 }
  0x98   :  { %p5320_p10 = pnand %p5318_p9, %p5315_p8 }
  0x9a   :  { %5323 = shalt.err (!%p5320_p10)
}
  0x9b   :  { %s5324_s23 = scalar_lea.vmem %s128_s18, 512  ;;  %p5329_p12 = scmp.lt.s32.totalorder %s128_s18, %s128_s18 }
  0x9c   :  { %p5325_p11 = scmp.ne.s32.totalorder %s128_s18, %s5324_s23  ;;  %p5330_p13 = scmp.lt.s32.totalorder %s5324_s23, %s5324_s23 }
  0x9e   :  { %p5331_p0 = por %p5330_p13, %p5329_p12 }
  0xa0   :  { %p5332_p1 = pnand %p5331_p0, %p5325_p11 }
  0xa2   :  { %5335 = shalt.err (!%p5332_p1)
}
  0xa3   :  { %133 = dma.hbm_to_vmem [thread:$0]  %s6250_s14, 512, %s128_s18, [#allocation15], %s5375_s11, %s5375_s11, %s5376_s22  }
  0xa4   :  { %5358 = dma.done.wait [#allocation3], 256  }
  0xa5   :  { %5359 = vsyncadd [#allocation3], 4294967040 }
  0xa6   :  { %5360 = dma.done.wait [#allocation6], 80  }
  0xa7   :  { %5361 = vsyncadd [#allocation6], 4294967216 }
  0xa8   :  { %5362 = dma.done.wait [#allocation9], 32  }
  0xa9   :  { %5363 = vsyncadd [#allocation9], 4294967264 }
  0xaa   :  { %5364 = dma.done.wait [#allocation12], 32  }
  0xab   :  { %5365 = vsyncadd [#allocation12], 4294967264 }
  0xac   :  { %5366 = dma.done.wait [#allocation15], 528  }
  0xad   :  { %5367 = vsyncadd [#allocation15], 4294966768  ;;  %vm213_vm0 = vcmask 1043456   ;;  %vm206_vm1 = vcmask 31744   ;;  %v198_v0 = vld [vmem:[#allocation5] sm:$0xf] }
  0xae   :  { %s6259_s28 = sld [smem:[#allocation24_spill]]  ;;  %4132 = vmatprep.subr.msk.mxu1 %vm213_vm0, %v198_v0  ;;  %v3787_v3 = vld [vmem:[%s6239_s3] ss:$0 sm:$0xff]  ;;  %vm294_vm2 = vcmask 261120   ;;  %v345_v15 = vld [vmem:[%s6242_s6 + $0x8] sm:$0xff]  ;;  %v346_v16 = vld [vmem:[%s6242_s6 + $0x10] sm:$0xff] }
  0xaf   :  { %4133 = vmatpush3.msk.msra.mxu1 %vm213_vm0, %v198_v0  ;;  %v344_v14 = vld [vmem:[%s6242_s6] sm:$0xff]  ;;  %v347_v18 = vld [vmem:[%s6242_s6 + $0x18] sm:$0xff]  ;;  %v189_v21 = vld [vmem:[%s6252_s16 + $0x8] sm:$0xff]  ;;  %vm436_vm3 = vcmask 523264   ;;  %vm750_vm4 = vcmask 130048  }
  0xb0   :  { %v4617_v17 = vpack.c.bf16 %v345_v15, %v344_v14  ;;  %v4621_v19 = vpack.c.bf16 %v347_v18, %v346_v16  ;;  %v188_v20 = vld [vmem:[%s6252_s16] sm:$0xff]  ;;  %v168_v24 = vld [vmem:[%s6244_s8 + $0x8] sm:$0xff]  ;;  %v190_v25 = vld [vmem:[%s6252_s16 + $0x10] sm:$0xff] }
  0xb1   :  { %v167_v22 = vld [vmem:[%s6244_s8] sm:$0xff]  ;;  %v5625_v23 = vpack.c.bf16 %v189_v21, %v188_v20  ;;  %v191_v26 = vld [vmem:[%s6252_s16 + $0x18] sm:$0xff]  ;;  %v193_v30 = vld [vmem:[%s6252_s16 + $0x28] sm:$0xff] }
  0xb2   :  { %4618 = vmatprep.subr.bf16.mxu1 %v4617_v17  ;;  %v5636_v27 = vpack.c.bf16 %v168_v24, %v167_v22  ;;  %v5638_v28 = vpack.c.bf16 %v191_v26, %v190_v25  ;;  %v192_v29 = vld [vmem:[%s6252_s16 + $0x20] sm:$0xff]  ;;  %v169_v58 = vld [vmem:[%s6244_s8 + $0x10] sm:$0xff]  ;;  %v170_v59 = vld [vmem:[%s6244_s8 + $0x18] sm:$0xff] }
  0xb3   :  { %4626 = vmatprep.subr.bf16.mxu0 %v5625_v23  ;;  %v5650_v31 = vpack.c.bf16 %v193_v30, %v192_v29  ;;  %v3791_v48 = vld [vmem:[#allocation7] ss:$0 sm:$0xff]  ;;  %v3792_v50 = vld [vmem:[#allocation8] ss:$0 sm:$0xff]  ;;  %v5663_v62 = vpack.c.bf16 %v170_v59, %v169_v58  ;;  %v172_v0 = vld [vmem:[%s6244_s8 + $0x28] sm:$0xff] }
  0xb4   :  { %v196_v1 = vld [vmem:[%s6259_s28] sm:$0xff]  ;;  %v197_v2 = vld [vmem:[%s6259_s28 + $0x8] sm:$0xff]  ;;  %4628 = vmatpush3.bf16.msra.mxu0 %v5625_v23  ;;  %v180_v30 = vld [vmem:[%s6248_s12 + $0x10] sm:$0xff] }
  0xb5   :  { %4134 = vmatprep.mubr.msk.f32.mxu1 %vm206_vm1, %v196_v1  ;;  %4630 = vmatprep.subr.bf16.mxu0 %v5638_v28  ;;  %v171_v63 = vld [vmem:[%s6244_s8 + $0x20] sm:$0xff]  ;;  %v179_v26 = vld [vmem:[%s6248_s12 + $0x8] sm:$0xff] }
  0xb6   :  { %4135 = vmatmul.mubr.msk.f32.vlgmr.msra.gmra.mrb[0].mxu1 %vm206_vm1, %v197_v2  ;;  %v5674_v1 = vpack.c.bf16 %v172_v0, %v171_v63  ;;  %v194_v2 = vld [vmem:[%s6252_s16 + $0x30] sm:$0xff]  ;;  %v178_v25 = vld [vmem:[%s6248_s12] sm:$0xff] }
  0xb7   :  { %4620 = vmatpush3.bf16.msra.mxu1 %v4617_v17  ;;  %v5729_v29 = vpack.c.bf16 %v179_v26, %v178_v25  ;;  %v5756_v63 = vld [vmem:[%s6249_s13] ss:$0 sm:$0xff] }
  0xb8   :  { %4622 = vmatprep.subr.bf16.mxu1 %v4621_v19  ;;  %4632 = vmatpush3.bf16.msra.mxu0 %v5638_v28 }
  0xb9   :  { %4634 = vmatprep.subr.bf16.mxu0 %v5650_v31 }
  0xbb   :  { %4624 = vmatpush3.bf16.msra.mxu1 %v4621_v19 }
  0xbc   :  { %4642 = vmatprep.subr.bf16.mxu1 %v5636_v27  ;;  %4636 = vmatpush3.bf16.msra.mxu0 %v5650_v31 }
 0x189   :  { %v4136_v4 = vpop.f32.mrb[0].mxu1 }
 0x18a   :  { %v283_v5 = vpop.f32.mrb[1].mxu1  ;;  %v5595_v6 = vadd.f32 %v4136_v4, %v3787_v3  ;;  %v173_v4 = vld [vmem:[%s6244_s8 + $0x30] sm:$0xff] }
 0x18b   :  { %v284_v7 = vadd.f32 %v3787_v3, %v283_v5  ;;  %v195_v3 = vld [vmem:[%s6252_s16 + $0x38] sm:$0xff] }
 0x18c   :  { %v305_v11 = vmul.f32 %v5595_v6, %v5595_v6  ;;  %v298_v12 = vsel %vm294_vm2, %v5595_v6, 0.0  ;;  %v5688_v5 = vpack.c.bf16 %v195_v3, %v194_v2 }
 0x18d   :  { %v295_v8 = vsel %vm294_vm2, %v284_v7, 0.0  ;;  %v304_v9 = vmul.f32 %v284_v7, %v284_v7 }
 0x18e   :  { %296 = vadd.xlane.f32.xlu0 %v295_v8  ;;  %v309_v13 = vsel %vm294_vm2, %v305_v11, 0.0  ;;  %4638 = vmatprep.subr.bf16.mxu0 %v5688_v5  ;;  %v3793_v8 = vld [vmem:[#allocation10] ss:$0 sm:$0xff] }
 0x18f   :  { %v306_v10 = vsel %vm294_vm2, %v304_v9, 0.0  ;;  %4640 = vmatpush3.bf16.msra.mxu0 %v5688_v5 }
 0x190   :  { %307 = vadd.xlane.f32.xlu1 %v306_v10  ;;  %4658 = vmatprep.subr.bf16.mxu0 %v5729_v29 }
 0x192   :  { %299 = vadd.xlane.f32.xlu0 %v298_v12 }
 0x194   :  { %310 = vadd.xlane.f32.xlu1 %v309_v13  ;;  %v5715_v13 = vld [vmem:[#allocation11] ss:$0 sm:$0xff] }
 0x21b   :  { %v297_v32 = vpop.xlane.xlu0 %296 }
 0x21c   :  { %v302_v33 = vmul.f32 0.03125, %v297_v32  ;;  %v181_v32 = vld [vmem:[%s6248_s12 + $0x18] sm:$0xff] }
 0x21d   :  { %v308_v34 = vpop.xlane.xlu1 %307 }
 0x21e   :  { %v314_v35 = vmul.f32 %v302_v33, %v302_v33  ;;  %v312_v36 = vmul.f32 0.03125, %v308_v34  ;;  %v318_v46 = vsub.f32 %v284_v7, %v302_v33  ;;  %v5737_v33 = vpack.c.bf16 %v181_v32, %v180_v30 }
 0x21f   :  { %v300_v37 = vpop.xlane.xlu0 %299 }
 0x220   :  { %v316_v38 = vsub.f32 %v312_v36, %v314_v35  ;;  %v303_v39 = vmul.f32 0.03125, %v300_v37 }
 0x221   :  { %v311_v40 = vpop.xlane.xlu1 %310 }
 0x222   :  { %v320_v41 = vadd.f32 1e-05, %v316_v38  ;;  %v315_v42 = vmul.f32 %v303_v39, %v303_v39  ;;  %v313_v43 = vmul.f32 0.03125, %v311_v40  ;;  %v319_v51 = vsub.f32 %v5595_v6, %v303_v39  ;;  %v174_v6 = vld [vmem:[%s6244_s8 + $0x38] sm:$0xff] }
 0x223   :  { %v5693_v7 = vpack.c.bf16 %v174_v6, %v173_v4 }
 0x224   :  { %5015 = vrsqrt.f32 %v320_v41  ;;  %v317_v44 = vsub.f32 %v313_v43, %v315_v42 }
 0x226   :  { %v321_v45 = vadd.f32 1e-05, %v317_v44 }
 0x228   :  { %5017 = vrsqrt.f32 %v321_v45 }
 0x22e   :  { %v5016_v47 = vpop.eup %5015 }
 0x22f   :  { %v324_v49 = vmul.f32 %v5016_v47, %v318_v46 }
 0x231   :  { %v332_v52 = vmul.f32 %v3791_v48, %v324_v49 }
 0x232   :  { %v5018_v53 = vpop.eup %5017 }
 0x233   :  { %v325_v54 = vmul.f32 %v5018_v53, %v319_v51  ;;  %v340_v55 = vadd.f32 %v3792_v50, %v332_v52  ;;  %v5743_v51 = vld [vmem:[#allocation13] ss:$0 sm:$0xff] }
 0x235   :  { %v333_v56 = vmul.f32 %v3791_v48, %v325_v54  ;;  %v342_v57 = vmax.f32 %v340_v55, 0.0  ;;  %v5745_v54 = vld [vmem:[#allocation14] ss:$0 sm:$0xff] }
 0x237   :  { %v341_v60 = vadd.f32 %v3792_v50, %v333_v56  ;;  %4145 = vmatprep.mubr.msk.f32.mxu1 %vm294_vm2, %v342_v57 }
 0x239   :  { %v343_v61 = vmax.f32 %v341_v60, 0.0 }
 0x23b   :  { %4146 = vmatmul.mubr.msk.f32.vlgmr.msra.gmra.mrb[2].mxu1 %vm294_vm2, %v343_v61 }
 0x23c   :  { %4644 = vmatpush3.bf16.msra.mxu1 %v5636_v27 }
 0x23d   :  { %4646 = vmatprep.subr.bf16.mxu1 %v5663_v62 }
 0x240   :  { %4648 = vmatpush3.bf16.msra.mxu1 %v5663_v62 }
 0x241   :  { %4650 = vmatprep.subr.bf16.mxu1 %v5674_v1 }
 0x244   :  { %4652 = vmatpush3.bf16.msra.mxu1 %v5674_v1 }
 0x245   :  { %4654 = vmatprep.subr.bf16.mxu1 %v5693_v7 }
 0x248   :  { %4656 = vmatpush3.bf16.msra.mxu1 %v5693_v7 }
 0x30e   :  { %v4147_v9 = vpop.f32.mrb[2].mxu1 }
 0x30f   :  { %v5699_v10 = vadd.f32 %v4147_v9, %v3793_v8  ;;  %v427_v11 = vpop.f32.mrb[3].mxu1 }
 0x310   :  { %v5701_v12 = vadd.f32 %v3793_v8, %v427_v11 }
 0x311   :  { %438 = vst.msk [vmem:[#allocation17 + $0x8] sm:$0xff] %vm436_vm3, %v5699_v10 }
 0x312   :  { %437 = vst.msk [vmem:[#allocation17] sm:$0xff] %vm436_vm3, %v5701_v12  ;;  %4164 = vmatprep.mubr.msk.f32.mxu0 %vm436_vm3, %v5701_v12  ;;  %4183 = vmatprep.mubr.msk.f32.mxu1 %vm436_vm3, %v5701_v12 }
 0x313   :  { %4165 = vmatmul.mubr.msk.f32.vlgmr.msra.gmra.mrb[0].mxu0 %vm436_vm3, %v5699_v10  ;;  %4184 = vmatmul.mubr.msk.f32.vlgmr.msra.gmra.mrb[4].mxu1 %vm436_vm3, %v5699_v10 }
 0x314   :  { %4660 = vmatpush3.bf16.msra.mxu0 %v5729_v29 }
 0x315   :  { %4662 = vmatprep.subr.bf16.mxu0 %v5737_v33 }
 0x318   :  { %4664 = vmatpush3.bf16.msra.mxu0 %v5737_v33 }
 0x3e6   :  { %v4185_v14 = vpop.f32.mrb[4].mxu1 }
 0x3e7   :  { %v598_v15 = vadd.f32 %v4185_v14, %v5715_v13  ;;  %v592_v16 = vpop.f32.mrb[5].mxu1  ;;  %v5762_v14 = vld [vmem:[#allocation2] sm:$0xff] }
 0x3e8   :  { %v593_v17 = vadd.f32 %v5715_v13, %v592_v16  ;;  %4201 = vmatprep.mubr.msk.f32.mxu1 %vm750_vm4, %v5762_v14  ;;  %v184_v16 = vld [vmem:[#allocation16 + $0x8] sm:$0xff] }
 0x3e9   :  { %v604_v18 = vsel %vm294_vm2, %v598_v15, 0.0  ;;  %v610_v19 = vmul.f32 %v598_v15, %v598_v15 }
 0x3ea   :  { %605 = vadd.xlane.f32.xlu1 %v604_v18  ;;  %v601_v20 = vsel %vm294_vm2, %v593_v17, 0.0  ;;  %v609_v21 = vmul.f32 %v593_v17, %v593_v17 }
 0x3eb   :  { %602 = vadd.xlane.f32.xlu0 %v601_v20  ;;  %v614_v22 = vsel %vm294_vm2, %v610_v19, 0.0  ;;  %v186_v19 = vld [vmem:[#allocation16 + $0x18] sm:$0xff] }
 0x3ec   :  { %v611_v24 = vsel %vm294_vm2, %v609_v21, 0.0 }
 0x3ee   :  { %615 = vadd.xlane.f32.xlu1 %v614_v22 }
 0x3ef   :  { %612 = vadd.xlane.f32.xlu0 %v611_v24 }
 0x477   :  { %v606_v34 = vpop.xlane.xlu1 %605 }
 0x478   :  { %v608_v35 = vmul.f32 0.03125, %v606_v34  ;;  %v603_v36 = vpop.xlane.xlu0 %602 }
 0x479   :  { %v607_v37 = vmul.f32 0.03125, %v603_v36  ;;  %v5775_v36 = vld [vmem:[#allocation2 + $0x8] sm:$0xff] }
 0x47a   :  { %v620_v39 = vmul.f32 %v608_v35, %v608_v35  ;;  %v624_v48 = vsub.f32 %v598_v15, %v608_v35  ;;  %v183_v15 = vld [vmem:[#allocation16] sm:$0xff] }
 0x47b   :  { %v616_v38 = vpop.xlane.xlu1 %615  ;;  %v619_v42 = vmul.f32 %v607_v37, %v607_v37  ;;  %v623_v50 = vsub.f32 %v593_v17, %v607_v37  ;;  %v185_v17 = vld [vmem:[#allocation16 + $0x10] sm:$0xff]  ;;  %v5766_v18 = vpack.c.bf16 %v184_v16, %v183_v15 }
 0x47c   :  { %v618_v40 = vmul.f32 0.03125, %v616_v38  ;;  %v613_v41 = vpop.xlane.xlu0 %612  ;;  %v5768_v20 = vpack.c.bf16 %v186_v19, %v185_v17 }
 0x47d   :  { %v617_v43 = vmul.f32 0.03125, %v613_v41  ;;  %4670 = vmatprep.subr.bf16.mxu0 %v5766_v18 }
 0x47e   :  { %v622_v44 = vsub.f32 %v618_v40, %v620_v39  ;;  %v5800_v39 = vld [vmem:[%s6251_s15] ss:$0 sm:$0xff] }
 0x47f   :  { %v621_v45 = vsub.f32 %v617_v43, %v619_v42 }
 0x480   :  { %v626_v46 = vadd.f32 1e-05, %v622_v44 }
 0x481   :  { %v625_v47 = vadd.f32 1e-05, %v621_v45 }
 0x482   :  { %5019 = vrsqrt.f32 %v626_v46 }
 0x483   :  { %5021 = vrsqrt.f32 %v625_v47 }
 0x48c   :  { %v5020_v49 = vpop.eup %5019 }
 0x48d   :  { %v5022_v52 = vpop.eup %5021  ;;  %v630_v53 = vmul.f32 %v5020_v49, %v624_v48 }
 0x48e   :  { %v629_v55 = vmul.f32 %v5022_v52, %v623_v50 }
 0x48f   :  { %v638_v56 = vmul.f32 %v5743_v51, %v630_v53 }
 0x490   :  { %v637_v57 = vmul.f32 %v5743_v51, %v629_v55 }
 0x491   :  { %v646_v58 = vadd.f32 %v5745_v54, %v638_v56 }
 0x492   :  { %v645_v59 = vadd.f32 %v5745_v54, %v637_v57 }
 0x493   :  { %v648_v61 = vmax.f32 %v646_v58, 0.0 }
 0x494   :  { %v647_v60 = vmax.f32 %v645_v59, 0.0 }
 0x496   :  { %4194 = vmatprep.mubr.msk.f32.mxu0 %vm294_vm2, %v647_v60 }
 0x497   :  { %4195 = vmatmul.mubr.msk.f32.vlgmr.msra.gmra.mrb[2].mxu0 %vm294_vm2, %v648_v61 }
 0x498   :  { %4672 = vmatpush3.bf16.msra.mxu0 %v5766_v18 }
 0x499   :  { %4674 = vmatprep.subr.bf16.mxu0 %v5768_v20 }
 0x49c   :  { %4676 = vmatpush3.bf16.msra.mxu0 %v5768_v20 }
 0x49d   :  { %4694 = vmatprep.subr.bf16.mxu0 %v5636_v27 }
 0x56a   :  { %v4196_v0 = vpop.f32.mrb[2].mxu0 }
 0x56b   :  { %v733_v2 = vadd.f32 %v4196_v0, %v5756_v63  ;;  %v727_v3 = vpop.f32.mrb[3].mxu0 }
 0x56c   :  { %v728_v4 = vadd.f32 %v5756_v63, %v727_v3 }
 0x56d   :  { %v737_v6 = vmul.f32 %v733_v2, %v733_v2 }
 0x56e   :  { %v736_v8 = vmul.f32 %v728_v4, %v728_v4 }
 0x56f   :  { %v741_v9 = vsel %vm294_vm2, %v737_v6, 0.0 }
 0x570   :  { %742 = vadd.xlane.f32.xlu1 %v741_v9  ;;  %v738_v11 = vsel %vm294_vm2, %v736_v8, 0.0 }
 0x571   :  { %739 = vadd.xlane.f32.xlu0 %v738_v11 }
 0x5fd   :  { %v743_v21 = vpop.xlane.xlu1 %742 }
 0x5fe   :  { %v745_v22 = vmax.f32 %v743_v21, 1e-24  ;;  %v740_v24 = vpop.xlane.xlu0 %739 }
 0x5ff   :  { %v744_v25 = vmax.f32 %v740_v24, 1e-24 }
 0x600   :  { %5023 = vrsqrt.f32 %v745_v22 }
 0x601   :  { %5025 = vrsqrt.f32 %v744_v25 }
 0x60a   :  { %v5024_v26 = vpop.eup %5023 }
 0x60b   :  { %v5026_v30 = vpop.eup %5025  ;;  %v749_v32 = vmul.f32 %v5024_v26, %v733_v2 }
 0x60c   :  { %v748_v34 = vmul.f32 %v5026_v30, %v728_v4 }
 0x60e   :  { %v4665_v35 = vpack.c.bf16 %v749_v32, %v748_v34 }
 0x610   :  { %4666 = vmatprep.subr.bf16.mxu1 %v4665_v35 }
 0x611   :  { %4668 = vmatpush3.bf16.msra.mxu1 %v4665_v35 }
 0x612   :  { %4678 = vmatprep.subr.bf16.mxu1 %v5625_v23 }
 0x614   :  { %4202 = vmatmul.mubr.msk.f32.vlgmr.msra.gmra.mrb[6].mxu1 %vm750_vm4, %v5775_v36 }
 0x615   :  { %4680 = vmatpush3.bf16.msra.mxu1 %v5625_v23 }
 0x616   :  { %4682 = vmatprep.subr.bf16.mxu1 %v5638_v28 }
 0x619   :  { %4684 = vmatpush3.bf16.msra.mxu1 %v5638_v28 }
 0x61a   :  { %4686 = vmatprep.subr.bf16.mxu1 %v5650_v31 }
 0x61d   :  { %4688 = vmatpush3.bf16.msra.mxu1 %v5650_v31 }
 0x61e   :  { %4690 = vmatprep.subr.bf16.mxu1 %v5688_v5 }
 0x621   :  { %4692 = vmatpush3.bf16.msra.mxu1 %v5688_v5 }
 0x622   :  { %4710 = vmatprep.subr.bf16.mxu1 %v5729_v29 }
 0x6e7   :  { %v4203_v37 = vpop.f32.mrb[6].mxu1 }
 0x6e8   :  { %v823_v38 = vpop.f32.mrb[7].mxu1 }
 0x6e9   :  { %4212 = vmatprep.mubr.msk.f32.mxu0 %vm294_vm2, %v823_v38 }
 0x6ea   :  { %4213 = vmatmul.mubr.msk.f32.vlgmr.msra.gmra.mrb[0].mxu0 %vm294_vm2, %v4203_v37 }
 0x6eb   :  { %4696 = vmatpush3.bf16.msra.mxu0 %v5636_v27 }
 0x6ec   :  { %4698 = vmatprep.subr.bf16.mxu0 %v5663_v62 }
 0x6ef   :  { %4700 = vmatpush3.bf16.msra.mxu0 %v5663_v62 }
 0x6f0   :  { %4702 = vmatprep.subr.bf16.mxu0 %v5674_v1 }
 0x6f3   :  { %4704 = vmatpush3.bf16.msra.mxu0 %v5674_v1 }
 0x6f4   :  { %4706 = vmatprep.subr.bf16.mxu0 %v5693_v7 }
 0x6f7   :  { %4708 = vmatpush3.bf16.msra.mxu0 %v5693_v7 }
 0x7bd   :  { %v4214_v40 = vpop.f32.mrb[0].mxu0 }
 0x7be   :  { %v920_v41 = vadd.f32 %v4214_v40, %v5800_v39  ;;  %v904_v42 = vpop.f32.mrb[1].mxu0 }
 0x7bf   :  { %v919_v43 = vadd.f32 %v5800_v39, %v904_v42 }
 0x7c0   :  { %5027 = vtanh.f32 %v920_v41 }
 0x7c1   :  { %5029 = vtanh.f32 %v919_v43 }
 0x7ca   :  { %v5028_v44 = vpop.eup %5027 }
 0x7cb   :  { %v5030_v45 = vpop.eup %5029  ;;  %v924_v46 = vmul.f32 %v5028_v44, %v5028_v44 }
 0x7cc   :  { %v923_v47 = vmul.f32 %v5030_v45, %v5030_v45 }
 0x7cd   :  { %v928_v48 = vsel %vm436_vm3, %v924_v46, 0.0 }
 0x7ce   :  { %929 = vadd.xlane.f32.xlu1 %v928_v48  ;;  %v925_v49 = vsel %vm436_vm3, %v923_v47, 0.0 }
 0x7cf   :  { %926 = vadd.xlane.f32.xlu0 %v925_v49 }
 0x85b   :  { %v930_v50 = vpop.xlane.xlu1 %929 }
 0x85c   :  { %v932_v52 = vadd.f32 1e-16, %v930_v50  ;;  %v927_v53 = vpop.xlane.xlu0 %926 }
 0x85d   :  { %v931_v55 = vadd.f32 1e-16, %v927_v53 }
 0x85e   :  { %5031 = vrsqrt.f32 %v932_v52 }
 0x85f   :  { %5033 = vrsqrt.f32 %v931_v55 }
 0x868   :  { %v5032_v56 = vpop.eup %5031 }
 0x869   :  { %v5034_v57 = vpop.eup %5033  ;;  %v936_v58 = vmul.f32 5.0, %v5032_v56 }
 0x86a   :  { %v935_v59 = vmul.f32 5.0, %v5034_v57 }
 0x86b   :  { %v938_v60 = vmin.f32 %v936_v58, 1.0 }
 0x86c   :  { %v937_v61 = vmin.f32 %v935_v59, 1.0 }
 0x86d   :  { %v940_v0 = vmul.f32 %v5028_v44, %v938_v60 }
 0x86e   :  { %v939_v2 = vmul.f32 %v5030_v45, %v937_v61 }
 0x86f   :  { %v5807_v3 = vadd.f32 %v940_v0, %v5699_v10 }
 0x870   :  { %v5810_v4 = vadd.f32 %v939_v2, %v5701_v12 }
 0x871   :  { %945 = vst.msk [vmem:[#allocation17 + $0x18] sm:$0xff] %vm436_vm3, %v5807_v3 }
 0x872   :  { %944 = vst.msk [vmem:[#allocation17 + $0x10] sm:$0xff] %vm436_vm3, %v5810_v4  ;;  %4231 = vmatprep.mubr.msk.f32.mxu1 %vm436_vm3, %v5810_v4  ;;  %4250 = vmatprep.mubr.msk.f32.mxu0 %vm436_vm3, %v5810_v4 }
 0x873   :  { %4232 = vmatmul.mubr.msk.f32.vlgmr.msra.gmra.mrb[8].mxu1 %vm436_vm3, %v5807_v3  ;;  %4251 = vmatmul.mubr.msk.f32.vlgmr.msra.gmra.mrb[4].mxu0 %vm436_vm3, %v5807_v3 }
 0x874   :  { %4712 = vmatpush3.bf16.msra.mxu1 %v5729_v29  ;;  %4268 = vmatprep.mubr.msk.f32.mxu0 %vm750_vm4, %v5762_v14 }
 0x875   :  { %4714 = vmatprep.subr.bf16.mxu1 %v5737_v33 }
 0x878   :  { %4716 = vmatpush3.bf16.msra.mxu1 %v5737_v33 }
 0x879   :  { %4722 = vmatprep.subr.bf16.mxu1 %v5766_v18 }
 0x946   :  { %v4252_v10 = vpop.f32.mrb[4].mxu0 }
 0x947   :  { %v1099_v12 = vadd.f32 %v4252_v10, %v5715_v13  ;;  %v1093_v6 = vpop.f32.mrb[5].mxu0 }
 0x948   :  { %v1094_v8 = vadd.f32 %v5715_v13, %v1093_v6 }
 0x949   :  { %v1105_v9 = vsel %vm294_vm2, %v1099_v12, 0.0  ;;  %v1111_v11 = vmul.f32 %v1099_v12, %v1099_v12 }
 0x94a   :  { %1106 = vadd.xlane.f32.xlu1 %v1105_v9  ;;  %v1102_v15 = vsel %vm294_vm2, %v1094_v8, 0.0  ;;  %v1110_v16 = vmul.f32 %v1094_v8, %v1094_v8 }
 0x94b   :  { %1103 = vadd.xlane.f32.xlu0 %v1102_v15  ;;  %v1115_v17 = vsel %vm294_vm2, %v1111_v11, 0.0 }
 0x94c   :  { %v1112_v19 = vsel %vm294_vm2, %v1110_v16, 0.0 }
 0x94e   :  { %1116 = vadd.xlane.f32.xlu1 %v1115_v17 }
 0x94f   :  { %1113 = vadd.xlane.f32.xlu0 %v1112_v19 }
 0x9d7   :  { %v1107_v21 = vpop.xlane.xlu1 %1106 }
 0x9d8   :  { %v1109_v22 = vmul.f32 0.03125, %v1107_v21  ;;  %v1104_v24 = vpop.xlane.xlu0 %1103 }
 0x9d9   :  { %v1108_v25 = vmul.f32 0.03125, %v1104_v24 }
 0x9da   :  { %v1121_v30 = vmul.f32 %v1109_v22, %v1109_v22  ;;  %v1125_v43 = vsub.f32 %v1099_v12, %v1109_v22 }
 0x9db   :  { %v1117_v26 = vpop.xlane.xlu1 %1116  ;;  %v1120_v35 = vmul.f32 %v1108_v25, %v1108_v25  ;;  %v1124_v45 = vsub.f32 %v1094_v8, %v1108_v25 }
 0x9dc   :  { %v1119_v32 = vmul.f32 0.03125, %v1117_v26  ;;  %v1114_v34 = vpop.xlane.xlu0 %1113 }
 0x9dd   :  { %v1118_v37 = vmul.f32 0.03125, %v1114_v34 }
 0x9de   :  { %v1123_v38 = vsub.f32 %v1119_v32, %v1121_v30 }
 0x9df   :  { %v1122_v40 = vsub.f32 %v1118_v37, %v1120_v35 }
 0x9e0   :  { %v1127_v41 = vadd.f32 1e-05, %v1123_v38 }
 0x9e1   :  { %v1126_v42 = vadd.f32 1e-05, %v1122_v40 }
 0x9e2   :  { %5035 = vrsqrt.f32 %v1127_v41 }
 0x9e3   :  { %5037 = vrsqrt.f32 %v1126_v42 }
 0x9ec   :  { %v5036_v44 = vpop.eup %5035 }
 0x9ed   :  { %v5038_v46 = vpop.eup %5037  ;;  %v1131_v47 = vmul.f32 %v5036_v44, %v1125_v43 }
 0x9ee   :  { %v1130_v48 = vmul.f32 %v5038_v46, %v1124_v45 }
 0x9ef   :  { %v1133_v49 = vmul.f32 %v5743_v51, %v1131_v47 }
 0x9f0   :  { %v1132_v50 = vmul.f32 %v5743_v51, %v1130_v48 }
 0x9f1   :  { %v1135_v52 = vadd.f32 %v5745_v54, %v1133_v49 }
 0x9f2   :  { %v1134_v53 = vadd.f32 %v5745_v54, %v1132_v50 }
 0x9f3   :  { %v1137_v56 = vmax.f32 %v1135_v52, 0.0 }
 0x9f4   :  { %v1136_v55 = vmax.f32 %v1134_v53, 0.0 }
 0x9f6   :  { %4261 = vmatprep.mubr.msk.f32.mxu1 %vm294_vm2, %v1136_v55 }
 0x9f7   :  { %4262 = vmatmul.mubr.msk.f32.vlgmr.msra.gmra.mrb[10].mxu1 %vm294_vm2, %v1137_v56 }
 0x9f8   :  { %4724 = vmatpush3.bf16.msra.mxu1 %v5766_v18 }
 0x9f9   :  { %4726 = vmatprep.subr.bf16.mxu1 %v5768_v20 }
 0x9fc   :  { %4728 = vmatpush3.bf16.msra.mxu1 %v5768_v20 }
 0x9fd   :  { %4746 = vmatprep.subr.bf16.mxu1 %v5636_v27 }
 0xaca   :  { %v4263_v57 = vpop.f32.mrb[10].mxu1 }
 0xacb   :  { %v1216_v58 = vadd.f32 %v4263_v57, %v5756_v63  ;;  %v1210_v59 = vpop.f32.mrb[11].mxu1 }
 0xacc   :  { %v1211_v60 = vadd.f32 %v5756_v63, %v1210_v59 }
 0xacd   :  { %v1220_v61 = vmul.f32 %v1216_v58, %v1216_v58 }
 0xace   :  { %v1219_v0 = vmul.f32 %v1211_v60, %v1211_v60 }
 0xacf   :  { %v1224_v2 = vsel %vm294_vm2, %v1220_v61, 0.0 }
 0xad0   :  { %1225 = vadd.xlane.f32.xlu1 %v1224_v2  ;;  %v1221_v10 = vsel %vm294_vm2, %v1219_v0, 0.0 }
 0xad1   :  { %1222 = vadd.xlane.f32.xlu0 %v1221_v10 }
 0xb5d   :  { %v1226_v12 = vpop.xlane.xlu1 %1225 }
 0xb5e   :  { %v1228_v6 = vmax.f32 %v1226_v12, 1e-24  ;;  %v1223_v8 = vpop.xlane.xlu0 %1222 }
 0xb5f   :  { %v1227_v9 = vmax.f32 %v1223_v8, 1e-24 }
 0xb60   :  { %5039 = vrsqrt.f32 %v1228_v6 }
 0xb61   :  { %5041 = vrsqrt.f32 %v1227_v9 }
 0xb6a   :  { %v5040_v11 = vpop.eup %5039 }
 0xb6b   :  { %v5042_v15 = vpop.eup %5041  ;;  %v1232_v16 = vmul.f32 %v5040_v11, %v1216_v58 }
 0xb6c   :  { %v1231_v17 = vmul.f32 %v5042_v15, %v1211_v60 }
 0xb6e   :  { %v4717_v19 = vpack.c.bf16 %v1232_v16, %v1231_v17 }
 0xb70   :  { %4718 = vmatprep.subr.bf16.mxu0 %v4717_v19 }
 0xb71   :  { %4720 = vmatpush3.bf16.msra.mxu0 %v4717_v19 }
 0xb72   :  { %4730 = vmatprep.subr.bf16.mxu0 %v5625_v23 }
 0xb74   :  { %4269 = vmatmul.mubr.msk.f32.vlgmr.msra.gmra.mrb[6].mxu0 %vm750_vm4, %v5775_v36 }
 0xb75   :  { %4732 = vmatpush3.bf16.msra.mxu0 %v5625_v23 }
 0xb76   :  { %4734 = vmatprep.subr.bf16.mxu0 %v5638_v28 }
 0xb79   :  { %4736 = vmatpush3.bf16.msra.mxu0 %v5638_v28 }
 0xb7a   :  { %4738 = vmatprep.subr.bf16.mxu0 %v5650_v31 }
 0xb7d   :  { %4740 = vmatpush3.bf16.msra.mxu0 %v5650_v31 }
 0xb7e   :  { %4742 = vmatprep.subr.bf16.mxu0 %v5688_v5 }
 0xb81   :  { %4744 = vmatpush3.bf16.msra.mxu0 %v5688_v5 }
 0xb82   :  { %4762 = vmatprep.subr.bf16.mxu0 %v5729_v29 }
 0xc47   :  { %v4270_v21 = vpop.f32.mrb[6].mxu0 }
 0xc48   :  { %v1299_v22 = vpop.f32.mrb[7].mxu0 }
 0xc49   :  { %4279 = vmatprep.mubr.msk.f32.mxu1 %vm294_vm2, %v1299_v22 }
 0xc4a   :  { %4280 = vmatmul.mubr.msk.f32.vlgmr.msra.gmra.mrb[8].mxu1 %vm294_vm2, %v4270_v21 }
 0xc4b   :  { %4748 = vmatpush3.bf16.msra.mxu1 %v5636_v27 }
 0xc4c   :  { %4750 = vmatprep.subr.bf16.mxu1 %v5663_v62 }
 0xc4f   :  { %4752 = vmatpush3.bf16.msra.mxu1 %v5663_v62 }
 0xc50   :  { %4754 = vmatprep.subr.bf16.mxu1 %v5674_v1 }
 0xc53   :  { %4756 = vmatpush3.bf16.msra.mxu1 %v5674_v1 }
 0xc54   :  { %4758 = vmatprep.subr.bf16.mxu1 %v5693_v7 }
 0xc57   :  { %4760 = vmatpush3.bf16.msra.mxu1 %v5693_v7 }
 0xd1d   :  { %v4281_v24 = vpop.f32.mrb[8].mxu1 }
 0xd1e   :  { %v1390_v25 = vadd.f32 %v4281_v24, %v5800_v39  ;;  %v1380_v26 = vpop.f32.mrb[9].mxu1 }
 0xd1f   :  { %v1389_v30 = vadd.f32 %v5800_v39, %v1380_v26 }
 0xd20   :  { %5043 = vtanh.f32 %v1390_v25 }
 0xd21   :  { %5045 = vtanh.f32 %v1389_v30 }
 0xd2a   :  { %v5044_v32 = vpop.eup %5043 }
 0xd2b   :  { %v5046_v34 = vpop.eup %5045  ;;  %v1394_v35 = vmul.f32 %v5044_v32, %v5044_v32 }
 0xd2c   :  { %v1393_v37 = vmul.f32 %v5046_v34, %v5046_v34 }
 0xd2d   :  { %v1398_v38 = vsel %vm436_vm3, %v1394_v35, 0.0 }
 0xd2e   :  { %1399 = vadd.xlane.f32.xlu1 %v1398_v38  ;;  %v1395_v40 = vsel %vm436_vm3, %v1393_v37, 0.0 }
 0xd2f   :  { %1396 = vadd.xlane.f32.xlu0 %v1395_v40 }
 0xdbb   :  { %v1400_v41 = vpop.xlane.xlu1 %1399 }
 0xdbc   :  { %v1402_v42 = vadd.f32 1e-16, %v1400_v41  ;;  %v1397_v43 = vpop.xlane.xlu0 %1396 }
 0xdbd   :  { %v1401_v44 = vadd.f32 1e-16, %v1397_v43 }
 0xdbe   :  { %5047 = vrsqrt.f32 %v1402_v42 }
 0xdbf   :  { %5049 = vrsqrt.f32 %v1401_v44 }
 0xdc8   :  { %v5048_v45 = vpop.eup %5047 }
 0xdc9   :  { %v5050_v46 = vpop.eup %5049  ;;  %v1406_v47 = vmul.f32 5.0, %v5048_v45 }
 0xdca   :  { %v1405_v48 = vmul.f32 5.0, %v5050_v46 }
 0xdcb   :  { %v1408_v49 = vmin.f32 %v1406_v47, 1.0 }
 0xdcc   :  { %v1407_v50 = vmin.f32 %v1405_v48, 1.0 }
 0xdcd   :  { %v1410_v52 = vmul.f32 %v5044_v32, %v1408_v49 }
 0xdce   :  { %v1409_v53 = vmul.f32 %v5046_v34, %v1407_v50 }
 0xdcf   :  { %v5875_v55 = vadd.f32 %v1410_v52, %v5807_v3 }
 0xdd0   :  { %v5878_v56 = vadd.f32 %v1409_v53, %v5810_v4 }
 0xdd1   :  { %1415 = vst.msk [vmem:[#allocation17 + $0x28] sm:$0xff] %vm436_vm3, %v5875_v55 }
 0xdd2   :  { %1414 = vst.msk [vmem:[#allocation17 + $0x20] sm:$0xff] %vm436_vm3, %v5878_v56  ;;  %4298 = vmatprep.mubr.msk.f32.mxu0 %vm436_vm3, %v5878_v56  ;;  %4317 = vmatprep.mubr.msk.f32.mxu1 %vm436_vm3, %v5878_v56 }
 0xdd3   :  { %4299 = vmatmul.mubr.msk.f32.vlgmr.msra.gmra.mrb[8].mxu0 %vm436_vm3, %v5875_v55  ;;  %4318 = vmatmul.mubr.msk.f32.vlgmr.msra.gmra.mrb[12].mxu1 %vm436_vm3, %v5875_v55 }
 0xdd4   :  { %4764 = vmatpush3.bf16.msra.mxu0 %v5729_v29  ;;  %4335 = vmatprep.mubr.msk.f32.mxu1 %vm750_vm4, %v5762_v14 }
 0xdd5   :  { %4766 = vmatprep.subr.bf16.mxu0 %v5737_v33 }
 0xdd8   :  { %4768 = vmatpush3.bf16.msra.mxu0 %v5737_v33 }
 0xdd9   :  { %4774 = vmatprep.subr.bf16.mxu0 %v5766_v18 }
 0xea6   :  { %v4319_v3 = vpop.f32.mrb[12].mxu1 }
 0xea7   :  { %v1569_v4 = vadd.f32 %v4319_v3, %v5715_v13  ;;  %v1563_v57 = vpop.f32.mrb[13].mxu1 }
 0xea8   :  { %v1564_v58 = vadd.f32 %v5715_v13, %v1563_v57 }
 0xea9   :  { %v1575_v59 = vsel %vm294_vm2, %v1569_v4, 0.0  ;;  %v1581_v60 = vmul.f32 %v1569_v4, %v1569_v4 }
 0xeaa   :  { %1576 = vadd.xlane.f32.xlu1 %v1575_v59  ;;  %v1572_v61 = vsel %vm294_vm2, %v1564_v58, 0.0  ;;  %v1580_v0 = vmul.f32 %v1564_v58, %v1564_v58 }
 0xeab   :  { %1573 = vadd.xlane.f32.xlu0 %v1572_v61  ;;  %v1585_v2 = vsel %vm294_vm2, %v1581_v60, 0.0 }
 0xeac   :  { %v1582_v10 = vsel %vm294_vm2, %v1580_v0, 0.0 }
 0xeae   :  { %1586 = vadd.xlane.f32.xlu1 %v1585_v2 }
 0xeaf   :  { %1583 = vadd.xlane.f32.xlu0 %v1582_v10 }
 0xf37   :  { %v1577_v12 = vpop.xlane.xlu1 %1576 }
 0xf38   :  { %v1579_v6 = vmul.f32 0.03125, %v1577_v12  ;;  %v1574_v8 = vpop.xlane.xlu0 %1573 }
 0xf39   :  { %v1578_v9 = vmul.f32 0.03125, %v1574_v8 }
 0xf3a   :  { %v1591_v15 = vmul.f32 %v1579_v6, %v1579_v6  ;;  %v1595_v30 = vsub.f32 %v1569_v4, %v1579_v6 }
 0xf3b   :  { %v1587_v11 = vpop.xlane.xlu1 %1586  ;;  %v1590_v19 = vmul.f32 %v1578_v9, %v1578_v9  ;;  %v1594_v34 = vsub.f32 %v1564_v58, %v1578_v9 }
 0xf3c   :  { %v1589_v16 = vmul.f32 0.03125, %v1587_v11  ;;  %v1584_v17 = vpop.xlane.xlu0 %1583 }
 0xf3d   :  { %v1588_v21 = vmul.f32 0.03125, %v1584_v17 }
 0xf3e   :  { %v1593_v22 = vsub.f32 %v1589_v16, %v1591_v15 }
 0xf3f   :  { %v1592_v24 = vsub.f32 %v1588_v21, %v1590_v19 }
 0xf40   :  { %v1597_v25 = vadd.f32 1e-05, %v1593_v22 }
 0xf41   :  { %v1596_v26 = vadd.f32 1e-05, %v1592_v24 }
 0xf42   :  { %5051 = vrsqrt.f32 %v1597_v25 }
 0xf43   :  { %5053 = vrsqrt.f32 %v1596_v26 }
 0xf4c   :  { %v5052_v32 = vpop.eup %5051 }
 0xf4d   :  { %v5054_v35 = vpop.eup %5053  ;;  %v1601_v37 = vmul.f32 %v5052_v32, %v1595_v30 }
 0xf4e   :  { %v1600_v38 = vmul.f32 %v5054_v35, %v1594_v34 }
 0xf4f   :  { %v1603_v40 = vmul.f32 %v5743_v51, %v1601_v37 }
 0xf50   :  { %v1602_v41 = vmul.f32 %v5743_v51, %v1600_v38 }
 0xf51   :  { %v1605_v42 = vadd.f32 %v5745_v54, %v1603_v40 }
 0xf52   :  { %v1604_v43 = vadd.f32 %v5745_v54, %v1602_v41 }
 0xf53   :  { %v1607_v45 = vmax.f32 %v1605_v42, 0.0 }
 0xf54   :  { %v1606_v44 = vmax.f32 %v1604_v43, 0.0 }
 0xf56   :  { %4328 = vmatprep.mubr.msk.f32.mxu0 %vm294_vm2, %v1606_v44 }
 0xf57   :  { %4329 = vmatmul.mubr.msk.f32.vlgmr.msra.gmra.mrb[10].mxu0 %vm294_vm2, %v1607_v45 }
 0xf58   :  { %4776 = vmatpush3.bf16.msra.mxu0 %v5766_v18 }
 0xf59   :  { %4778 = vmatprep.subr.bf16.mxu0 %v5768_v20 }
 0xf5c   :  { %4780 = vmatpush3.bf16.msra.mxu0 %v5768_v20 }
 0xf5d   :  { %4798 = vmatprep.subr.bf16.mxu0 %v5636_v27 }
0x102a   :  { %v4330_v46 = vpop.f32.mrb[10].mxu0 }
0x102b   :  { %v1686_v47 = vadd.f32 %v4330_v46, %v5756_v63  ;;  %v1680_v48 = vpop.f32.mrb[11].mxu0 }
0x102c   :  { %v1681_v49 = vadd.f32 %v5756_v63, %v1680_v48 }
0x102d   :  { %v1690_v50 = vmul.f32 %v1686_v47, %v1686_v47 }
0x102e   :  { %v1689_v52 = vmul.f32 %v1681_v49, %v1681_v49 }
0x102f   :  { %v1694_v53 = vsel %vm294_vm2, %v1690_v50, 0.0 }
0x1030   :  { %1695 = vadd.xlane.f32.xlu1 %v1694_v53  ;;  %v1691_v3 = vsel %vm294_vm2, %v1689_v52, 0.0 }
0x1031   :  { %1692 = vadd.xlane.f32.xlu0 %v1691_v3 }
0x10bd   :  { %v1696_v4 = vpop.xlane.xlu1 %1695 }
0x10be   :  { %v1698_v57 = vmax.f32 %v1696_v4, 1e-24  ;;  %v1693_v58 = vpop.xlane.xlu0 %1692 }
0x10bf   :  { %v1697_v59 = vmax.f32 %v1693_v58, 1e-24 }
0x10c0   :  { %5055 = vrsqrt.f32 %v1698_v57 }
0x10c1   :  { %5057 = vrsqrt.f32 %v1697_v59 }
0x10ca   :  { %v5056_v60 = vpop.eup %5055 }
0x10cb   :  { %v5058_v61 = vpop.eup %5057  ;;  %v1702_v0 = vmul.f32 %v5056_v60, %v1686_v47 }
0x10cc   :  { %v1701_v2 = vmul.f32 %v5058_v61, %v1681_v49 }
0x10ce   :  { %v4769_v10 = vpack.c.bf16 %v1702_v0, %v1701_v2 }
0x10d0   :  { %4770 = vmatprep.subr.bf16.mxu1 %v4769_v10 }
0x10d1   :  { %4772 = vmatpush3.bf16.msra.mxu1 %v4769_v10 }
0x10d2   :  { %4782 = vmatprep.subr.bf16.mxu1 %v5625_v23 }
0x10d4   :  { %4336 = vmatmul.mubr.msk.f32.vlgmr.msra.gmra.mrb[14].mxu1 %vm750_vm4, %v5775_v36 }
0x10d5   :  { %4784 = vmatpush3.bf16.msra.mxu1 %v5625_v23 }
0x10d6   :  { %4786 = vmatprep.subr.bf16.mxu1 %v5638_v28 }
0x10d9   :  { %4788 = vmatpush3.bf16.msra.mxu1 %v5638_v28 }
0x10da   :  { %4790 = vmatprep.subr.bf16.mxu1 %v5650_v31 }
0x10dd   :  { %4792 = vmatpush3.bf16.msra.mxu1 %v5650_v31 }
0x10de   :  { %4794 = vmatprep.subr.bf16.mxu1 %v5688_v5 }
0x10e1   :  { %4796 = vmatpush3.bf16.msra.mxu1 %v5688_v5 }
0x10e2   :  { %4814 = vmatprep.subr.bf16.mxu1 %v5729_v29 }
0x11a7   :  { %v4337_v12 = vpop.f32.mrb[14].mxu1 }
0x11a8   :  { %v1769_v6 = vpop.f32.mrb[15].mxu1 }
0x11a9   :  { %4346 = vmatprep.mubr.msk.f32.mxu0 %vm294_vm2, %v1769_v6 }
0x11aa   :  { %4347 = vmatmul.mubr.msk.f32.vlgmr.msra.gmra.mrb[8].mxu0 %vm294_vm2, %v4337_v12 }
0x11ab   :  { %4800 = vmatpush3.bf16.msra.mxu0 %v5636_v27 }
0x11ac   :  { %4802 = vmatprep.subr.bf16.mxu0 %v5663_v62 }
0x11af   :  { %4804 = vmatpush3.bf16.msra.mxu0 %v5663_v62 }
0x11b0   :  { %4806 = vmatprep.subr.bf16.mxu0 %v5674_v1 }
0x11b3   :  { %4808 = vmatpush3.bf16.msra.mxu0 %v5674_v1 }
0x11b4   :  { %4810 = vmatprep.subr.bf16.mxu0 %v5693_v7 }
0x11b7   :  { %4812 = vmatpush3.bf16.msra.mxu0 %v5693_v7 }
0x127d   :  { %v4348_v8 = vpop.f32.mrb[8].mxu0 }
0x127e   :  { %v1860_v9 = vadd.f32 %v4348_v8, %v5800_v39  ;;  %v1850_v11 = vpop.f32.mrb[9].mxu0 }
0x127f   :  { %v1859_v15 = vadd.f32 %v5800_v39, %v1850_v11 }
0x1280   :  { %5059 = vtanh.f32 %v1860_v9 }
0x1281   :  { %5061 = vtanh.f32 %v1859_v15 }
0x128a   :  { %v5060_v16 = vpop.eup %5059 }
0x128b   :  { %v5062_v17 = vpop.eup %5061  ;;  %v1864_v19 = vmul.f32 %v5060_v16, %v5060_v16 }
0x128c   :  { %v1863_v21 = vmul.f32 %v5062_v17, %v5062_v17 }
0x128d   :  { %v1868_v22 = vsel %vm436_vm3, %v1864_v19, 0.0 }
0x128e   :  { %1869 = vadd.xlane.f32.xlu1 %v1868_v22  ;;  %v1865_v24 = vsel %vm436_vm3, %v1863_v21, 0.0 }
0x128f   :  { %1866 = vadd.xlane.f32.xlu0 %v1865_v24 }
0x131b   :  { %v1870_v25 = vpop.xlane.xlu1 %1869 }
0x131c   :  { %v1872_v26 = vadd.f32 1e-16, %v1870_v25  ;;  %v1867_v30 = vpop.xlane.xlu0 %1866 }
0x131d   :  { %v1871_v32 = vadd.f32 1e-16, %v1867_v30 }
0x131e   :  { %5063 = vrsqrt.f32 %v1872_v26 }
0x131f   :  { %5065 = vrsqrt.f32 %v1871_v32 }
0x1328   :  { %v5064_v34 = vpop.eup %5063 }
0x1329   :  { %v5066_v35 = vpop.eup %5065  ;;  %v1876_v37 = vmul.f32 5.0, %v5064_v34 }
0x132a   :  { %v1875_v38 = vmul.f32 5.0, %v5066_v35 }
0x132b   :  { %v1878_v40 = vmin.f32 %v1876_v37, 1.0 }
0x132c   :  { %v1877_v41 = vmin.f32 %v1875_v38, 1.0 }
0x132d   :  { %v1880_v42 = vmul.f32 %v5060_v16, %v1878_v40 }
0x132e   :  { %v1879_v43 = vmul.f32 %v5062_v17, %v1877_v41 }
0x132f   :  { %v5943_v44 = vadd.f32 %v1880_v42, %v5875_v55 }
0x1330   :  { %v5946_v45 = vadd.f32 %v1879_v43, %v5878_v56 }
0x1331   :  { %1885 = vst.msk [vmem:[#allocation17 + $0x38] sm:$0xff] %vm436_vm3, %v5943_v44 }
0x1332   :  { %1884 = vst.msk [vmem:[#allocation17 + $0x30] sm:$0xff] %vm436_vm3, %v5946_v45  ;;  %4365 = vmatprep.mubr.msk.f32.mxu1 %vm436_vm3, %v5946_v45  ;;  %4384 = vmatprep.mubr.msk.f32.mxu0 %vm436_vm3, %v5946_v45 }
0x1333   :  { %4366 = vmatmul.mubr.msk.f32.vlgmr.msra.gmra.mrb[16].mxu1 %vm436_vm3, %v5943_v44  ;;  %4385 = vmatmul.mubr.msk.f32.vlgmr.msra.gmra.mrb[12].mxu0 %vm436_vm3, %v5943_v44 }
0x1334   :  { %4816 = vmatpush3.bf16.msra.mxu1 %v5729_v29  ;;  %4402 = vmatprep.mubr.msk.f32.mxu0 %vm750_vm4, %v5762_v14 }
0x1335   :  { %4818 = vmatprep.subr.bf16.mxu1 %v5737_v33 }
0x1338   :  { %4820 = vmatpush3.bf16.msra.mxu1 %v5737_v33 }
0x1339   :  { %4826 = vmatprep.subr.bf16.mxu1 %v5766_v18 }
0x1406   :  { %v4386_v55 = vpop.f32.mrb[12].mxu0 }
0x1407   :  { %v2039_v56 = vadd.f32 %v4386_v55, %v5715_v13  ;;  %v2033_v46 = vpop.f32.mrb[13].mxu0 }
0x1408   :  { %v2034_v47 = vadd.f32 %v5715_v13, %v2033_v46 }
0x1409   :  { %v2045_v48 = vsel %vm294_vm2, %v2039_v56, 0.0  ;;  %v2051_v49 = vmul.f32 %v2039_v56, %v2039_v56 }
0x140a   :  { %2046 = vadd.xlane.f32.xlu1 %v2045_v48  ;;  %v2042_v50 = vsel %vm294_vm2, %v2034_v47, 0.0  ;;  %v2050_v52 = vmul.f32 %v2034_v47, %v2034_v47 }
0x140b   :  { %2043 = vadd.xlane.f32.xlu0 %v2042_v50  ;;  %v2055_v53 = vsel %vm294_vm2, %v2051_v49, 0.0 }
0x140c   :  { %v2052_v3 = vsel %vm294_vm2, %v2050_v52, 0.0 }
0x140e   :  { %2056 = vadd.xlane.f32.xlu1 %v2055_v53 }
0x140f   :  { %2053 = vadd.xlane.f32.xlu0 %v2052_v3 }
0x1497   :  { %v2047_v4 = vpop.xlane.xlu1 %2046 }
0x1498   :  { %v2049_v57 = vmul.f32 0.03125, %v2047_v4  ;;  %v2044_v58 = vpop.xlane.xlu0 %2043 }
0x1499   :  { %v2048_v59 = vmul.f32 0.03125, %v2044_v58 }
0x149a   :  { %v2061_v13 = vmul.f32 %v2049_v57, %v2049_v57  ;;  %v2065_v11 = vsub.f32 %v2039_v56, %v2049_v57 }
0x149b   :  { %v2057_v60 = vpop.xlane.xlu1 %2056  ;;  %v2060_v2 = vmul.f32 %v2048_v59, %v2048_v59  ;;  %v2064_v16 = vsub.f32 %v2034_v47, %v2048_v59 }
0x149c   :  { %v2059_v61 = vmul.f32 0.03125, %v2057_v60  ;;  %v2054_v0 = vpop.xlane.xlu0 %2053 }
0x149d   :  { %v2058_v10 = vmul.f32 0.03125, %v2054_v0 }
0x149e   :  { %v2063_v12 = vsub.f32 %v2059_v61, %v2061_v13 }
0x149f   :  { %v2062_v6 = vsub.f32 %v2058_v10, %v2060_v2 }
0x14a0   :  { %v2067_v8 = vadd.f32 1e-05, %v2063_v12 }
0x14a1   :  { %v2066_v9 = vadd.f32 1e-05, %v2062_v6 }
0x14a2   :  { %5067 = vrsqrt.f32 %v2067_v8 }
0x14a3   :  { %5069 = vrsqrt.f32 %v2066_v9 }
0x14ac   :  { %v5068_v15 = vpop.eup %5067 }
0x14ad   :  { %v5070_v17 = vpop.eup %5069  ;;  %v2071_v19 = vmul.f32 %v5068_v15, %v2065_v11 }
0x14ae   :  { %v2070_v21 = vmul.f32 %v5070_v17, %v2064_v16 }
0x14af   :  { %v2073_v22 = vmul.f32 %v5743_v51, %v2071_v19 }
0x14b0   :  { %v2072_v24 = vmul.f32 %v5743_v51, %v2070_v21 }
0x14b1   :  { %v2075_v25 = vadd.f32 %v5745_v54, %v2073_v22 }
0x14b2   :  { %v2074_v26 = vadd.f32 %v5745_v54, %v2072_v24 }
0x14b3   :  { %v2077_v32 = vmax.f32 %v2075_v25, 0.0 }
0x14b4   :  { %v2076_v30 = vmax.f32 %v2074_v26, 0.0 }
0x14b6   :  { %4395 = vmatprep.mubr.msk.f32.mxu1 %vm294_vm2, %v2076_v30 }
0x14b7   :  { %4396 = vmatmul.mubr.msk.f32.vlgmr.msra.gmra.mrb[18].mxu1 %vm294_vm2, %v2077_v32 }
0x14b8   :  { %4828 = vmatpush3.bf16.msra.mxu1 %v5766_v18 }
0x14b9   :  { %4830 = vmatprep.subr.bf16.mxu1 %v5768_v20 }
0x14bc   :  { %4832 = vmatpush3.bf16.msra.mxu1 %v5768_v20 }
0x14bd   :  { %4850 = vmatprep.subr.bf16.mxu1 %v5636_v27 }
0x158a   :  { %v4397_v34 = vpop.f32.mrb[18].mxu1 }
0x158b   :  { %v2156_v51 = vadd.f32 %v4397_v34, %v5756_v63  ;;  %v2150_v35 = vpop.f32.mrb[19].mxu1 }
0x158c   :  { %v2151_v54 = vadd.f32 %v5756_v63, %v2150_v35 }
0x158d   :  { %v2160_v37 = vmul.f32 %v2156_v51, %v2156_v51 }
0x158e   :  { %v2159_v38 = vmul.f32 %v2151_v54, %v2151_v54 }
0x158f   :  { %v2164_v40 = vsel %vm294_vm2, %v2160_v37, 0.0 }
0x1590   :  { %2165 = vadd.xlane.f32.xlu1 %v2164_v40  ;;  %v2161_v41 = vsel %vm294_vm2, %v2159_v38, 0.0 }
0x1591   :  { %2162 = vadd.xlane.f32.xlu0 %v2161_v41 }
0x161d   :  { %v2166_v42 = vpop.xlane.xlu1 %2165 }
0x161e   :  { %v2168_v43 = vmax.f32 %v2166_v42, 1e-24  ;;  %v2163_v55 = vpop.xlane.xlu0 %2162 }
0x161f   :  { %v2167_v56 = vmax.f32 %v2163_v55, 1e-24 }
0x1620   :  { %5071 = vrsqrt.f32 %v2168_v43 }
0x1621   :  { %5073 = vrsqrt.f32 %v2167_v56 }
0x162a   :  { %v5072_v46 = vpop.eup %5071 }
0x162b   :  { %v5074_v47 = vpop.eup %5073  ;;  %v2172_v48 = vmul.f32 %v5072_v46, %v2156_v51 }
0x162c   :  { %v2171_v49 = vmul.f32 %v5074_v47, %v2151_v54 }
0x162e   :  { %v4821_v50 = vpack.c.bf16 %v2172_v48, %v2171_v49 }
0x1630   :  { %4822 = vmatprep.subr.bf16.mxu0 %v4821_v50 }
0x1631   :  { %4824 = vmatpush3.bf16.msra.mxu0 %v4821_v50 }
0x1632   :  { %4834 = vmatprep.subr.bf16.mxu0 %v5625_v23 }
0x1634   :  { %4403 = vmatmul.mubr.msk.f32.vlgmr.msra.gmra.mrb[14].mxu0 %vm750_vm4, %v5775_v36 }
0x1635   :  { %4836 = vmatpush3.bf16.msra.mxu0 %v5625_v23 }
0x1636   :  { %4838 = vmatprep.subr.bf16.mxu0 %v5638_v28 }
0x1639   :  { %4840 = vmatpush3.bf16.msra.mxu0 %v5638_v28 }
0x163a   :  { %4842 = vmatprep.subr.bf16.mxu0 %v5650_v31 }
0x163d   :  { %4844 = vmatpush3.bf16.msra.mxu0 %v5650_v31 }
0x163e   :  { %4846 = vmatprep.subr.bf16.mxu0 %v5688_v5 }
0x1641   :  { %4848 = vmatpush3.bf16.msra.mxu0 %v5688_v5 }
0x1642   :  { %4866 = vmatprep.subr.bf16.mxu0 %v5729_v29 }
0x1707   :  { %v4404_v63 = vpop.f32.mrb[14].mxu0 }
0x1708   :  { %v2239_v52 = vpop.f32.mrb[15].mxu0 }
0x1709   :  { %4413 = vmatprep.mubr.msk.f32.mxu1 %vm294_vm2, %v2239_v52 }
0x170a   :  { %4414 = vmatmul.mubr.msk.f32.vlgmr.msra.gmra.mrb[16].mxu1 %vm294_vm2, %v4404_v63 }
0x170b   :  { %4852 = vmatpush3.bf16.msra.mxu1 %v5636_v27 }
0x170c   :  { %4854 = vmatprep.subr.bf16.mxu1 %v5663_v62 }
0x170f   :  { %4856 = vmatpush3.bf16.msra.mxu1 %v5663_v62 }
0x1710   :  { %4858 = vmatprep.subr.bf16.mxu1 %v5674_v1 }
0x1713   :  { %4860 = vmatpush3.bf16.msra.mxu1 %v5674_v1 }
0x1714   :  { %4862 = vmatprep.subr.bf16.mxu1 %v5693_v7 }
0x1717   :  { %4864 = vmatpush3.bf16.msra.mxu1 %v5693_v7 }
0x17dd   :  { %v4415_v36 = vpop.f32.mrb[16].mxu1 }
0x17de   :  { %v2330_v53 = vadd.f32 %v4415_v36, %v5800_v39  ;;  %v2320_v3 = vpop.f32.mrb[17].mxu1 }
0x17df   :  { %v2329_v4 = vadd.f32 %v5800_v39, %v2320_v3 }
0x17e0   :  { %5075 = vtanh.f32 %v2330_v53 }
0x17e1   :  { %5077 = vtanh.f32 %v2329_v4  ;;  %v6042_v4 = vld [vmem:[#allocation13] ss:$0 sm:$0xff] }
0x17ea   :  { %v5076_v57 = vpop.eup %5075 }
0x17eb   :  { %v5078_v58 = vpop.eup %5077  ;;  %v2334_v59 = vmul.f32 %v5076_v57, %v5076_v57 }
0x17ec   :  { %v2333_v60 = vmul.f32 %v5078_v58, %v5078_v58 }
0x17ed   :  { %v2338_v13 = vsel %vm436_vm3, %v2334_v59, 0.0  ;;  %v6046_v59 = vld [vmem:[#allocation14] ss:$0 sm:$0xff] }
0x17ee   :  { %2339 = vadd.xlane.f32.xlu1 %v2338_v13  ;;  %v2335_v61 = vsel %vm436_vm3, %v2333_v60, 0.0 }
0x17ef   :  { %2336 = vadd.xlane.f32.xlu0 %v2335_v61 }
0x187b   :  { %v2340_v0 = vpop.xlane.xlu1 %2339 }
0x187c   :  { %v2342_v2 = vadd.f32 1e-16, %v2340_v0  ;;  %v2337_v10 = vpop.xlane.xlu0 %2336 }
0x187d   :  { %v2341_v12 = vadd.f32 1e-16, %v2337_v10  ;;  %v6059_v10 = vld [vmem:[%s6249_s13] ss:$0 sm:$0xff] }
0x187e   :  { %5079 = vrsqrt.f32 %v2342_v2 }
0x187f   :  { %5081 = vrsqrt.f32 %v2341_v12 }
0x1888   :  { %v5080_v6 = vpop.eup %5079 }
0x1889   :  { %v5082_v39 = vpop.eup %5081  ;;  %v2346_v8 = vmul.f32 5.0, %v5080_v6 }
0x188a   :  { %v2345_v9 = vmul.f32 5.0, %v5082_v39 }
0x188b   :  { %v2348_v11 = vmin.f32 %v2346_v8, 1.0 }
0x188c   :  { %v2347_v15 = vmin.f32 %v2345_v9, 1.0 }
0x188d   :  { %v2350_v16 = vmul.f32 %v5076_v57, %v2348_v11 }
0x188e   :  { %v2349_v17 = vmul.f32 %v5078_v58, %v2347_v15 }
0x188f   :  { %v6011_v19 = vadd.f32 %v2350_v16, %v5943_v44 }
0x1890   :  { %v6014_v21 = vadd.f32 %v2349_v17, %v5946_v45  ;;  %v6034_v45 = vld [vmem:[#allocation11] ss:$0 sm:$0xff] }
0x1891   :  { %2355 = vst.msk [vmem:[#allocation17 + $0x48] sm:$0xff] %vm436_vm3, %v6011_v19 }
0x1892   :  { %2354 = vst.msk [vmem:[#allocation17 + $0x40] sm:$0xff] %vm436_vm3, %v6014_v21  ;;  %4432 = vmatprep.mubr.msk.f32.mxu0 %vm436_vm3, %v6014_v21  ;;  %4451 = vmatprep.mubr.msk.f32.mxu1 %vm436_vm3, %v6014_v21 }
0x1893   :  { %4433 = vmatmul.mubr.msk.f32.vlgmr.msra.gmra.mrb[16].mxu0 %vm436_vm3, %v6011_v19  ;;  %4452 = vmatmul.mubr.msk.f32.vlgmr.msra.gmra.mrb[20].mxu1 %vm436_vm3, %v6011_v19 }
0x1894   :  { %4868 = vmatpush3.bf16.msra.mxu0 %v5729_v29  ;;  %4469 = vmatprep.mubr.msk.f32.mxu1 %vm750_vm4, %v5762_v14 }
0x1895   :  { %4870 = vmatprep.subr.bf16.mxu0 %v5737_v33 }
0x1898   :  { %4872 = vmatpush3.bf16.msra.mxu0 %v5737_v33 }
0x1899   :  { %4878 = vmatprep.subr.bf16.mxu0 %v5766_v18 }
0x1966   :  { %v4453_v44 = vpop.f32.mrb[20].mxu1 }
0x1967   :  { %v2509_v22 = vadd.f32 %v6034_v45, %v4453_v44  ;;  %v2503_v24 = vpop.f32.mrb[21].mxu1 }
0x1968   :  { %v2504_v25 = vadd.f32 %v6034_v45, %v2503_v24 }
0x1969   :  { %v2515_v26 = vsel %vm294_vm2, %v2509_v22, 0.0  ;;  %v2521_v30 = vmul.f32 %v2509_v22, %v2509_v22 }
0x196a   :  { %2516 = vadd.xlane.f32.xlu1 %v2515_v26  ;;  %v2512_v14 = vsel %vm294_vm2, %v2504_v25, 0.0  ;;  %v2520_v32 = vmul.f32 %v2504_v25, %v2504_v25 }
0x196b   :  { %2513 = vadd.xlane.f32.xlu0 %v2512_v14  ;;  %v2525_v34 = vsel %vm294_vm2, %v2521_v30, 0.0 }
0x196c   :  { %v2522_v51 = vsel %vm294_vm2, %v2520_v32, 0.0  ;;  %v6066_v32 = vld [vmem:[#allocation2 + $0x8] sm:$0xff] }
0x196e   :  { %2526 = vadd.xlane.f32.xlu1 %v2525_v34 }
0x196f   :  { %2523 = vadd.xlane.f32.xlu0 %v2522_v51 }
0x19f7   :  { %v2517_v35 = vpop.xlane.xlu1 %2516 }
0x19f8   :  { %v2519_v54 = vmul.f32 0.03125, %v2517_v35  ;;  %v2514_v37 = vpop.xlane.xlu0 %2513 }
0x19f9   :  { %v2518_v38 = vmul.f32 0.03125, %v2514_v37 }
0x19fa   :  { %v2531_v41 = vmul.f32 %v2519_v54, %v2519_v54  ;;  %v2535_v50 = vsub.f32 %v2509_v22, %v2519_v54  ;;  %v6090_v54 = vld [vmem:[%s6251_s15] ss:$0 sm:$0xff]  ;;  %s5381_s15 = smov [#allocation17]  }
0x19fb   :  { %v2527_v40 = vpop.xlane.xlu1 %2526  ;;  %v2530_v55 = vmul.f32 %v2518_v38, %v2518_v38  ;;  %v2534_v52 = vsub.f32 %v2504_v25, %v2518_v38  ;;  %s3771_s2 = sshll.u32 %s5381_s15, 4  ;;  %s3772_s2 = int_to_ptr.vmem [resolvable:$true] %s3771_s2 }
0x19fc   :  { %v2529_v42 = vmul.f32 0.03125, %v2527_v40  ;;  %v2524_v43 = vpop.xlane.xlu0 %2523  ;;  %s5336_s4 = scalar_lea.vmem %s3772_s2, 2048  ;;  %p5341_p3 = scmp.lt.s32.totalorder %s3772_s2, %s3772_s2 }
0x19fd   :  { %v2528_v56 = vmul.f32 0.03125, %v2524_v43  ;;  %p5337_p2 = scmp.ne.s32.totalorder %s3772_s2, %s5336_s4  ;;  %p5342_p4 = scmp.lt.s32.totalorder %s5336_s4, %s5336_s4 }
0x19fe   :  { %v2533_v46 = vsub.f32 %v2529_v42, %v2531_v41 }
0x19ff   :  { %v2532_v47 = vsub.f32 %v2528_v56, %v2530_v55  ;;  %p5343_p5 = por %p5342_p4, %p5341_p3 }
0x1a00   :  { %v2537_v48 = vadd.f32 1e-05, %v2533_v46 }
0x1a01   :  { %v2536_v49 = vadd.f32 1e-05, %v2532_v47  ;;  %p5344_p6 = pnand %p5343_p5, %p5337_p2 }
0x1a02   :  { %5083 = vrsqrt.f32 %v2537_v48 }
0x1a03   :  { %5085 = vrsqrt.f32 %v2536_v49 }
0x1a0c   :  { %v5084_v63 = vpop.eup %5083 }
0x1a0d   :  { %v5086_v36 = vpop.eup %5085  ;;  %v2541_v53 = vmul.f32 %v5084_v63, %v2535_v50 }
0x1a0e   :  { %v2540_v3 = vmul.f32 %v5086_v36, %v2534_v52 }
0x1a0f   :  { %v2543_v57 = vmul.f32 %v6042_v4, %v2541_v53 }
0x1a10   :  { %v2542_v58 = vmul.f32 %v6042_v4, %v2540_v3 }
0x1a11   :  { %v2545_v60 = vadd.f32 %v6046_v59, %v2543_v57 }
0x1a12   :  { %v2544_v13 = vadd.f32 %v6046_v59, %v2542_v58 }
0x1a13   :  { %v2547_v0 = vmax.f32 %v2545_v60, 0.0 }
0x1a14   :  { %v2546_v61 = vmax.f32 %v2544_v13, 0.0 }
0x1a16   :  { %4462 = vmatprep.mubr.msk.f32.mxu0 %vm294_vm2, %v2546_v61 }
0x1a17   :  { %4463 = vmatmul.mubr.msk.f32.vlgmr.msra.gmra.mrb[18].mxu0 %vm294_vm2, %v2547_v0 }
0x1a18   :  { %4880 = vmatpush3.bf16.msra.mxu0 %v5766_v18 }
0x1a19   :  { %4882 = vmatprep.subr.bf16.mxu0 %v5768_v20 }
0x1a1c   :  { %4884 = vmatpush3.bf16.msra.mxu0 %v5768_v20 }
0x1a1d   :  { %4902 = vmatprep.subr.bf16.mxu0 %v5636_v27 }
0x1aea   :  { %v4464_v2 = vpop.f32.mrb[18].mxu0 }
0x1aeb   :  { %v2626_v12 = vadd.f32 %v6059_v10, %v4464_v2  ;;  %v2620_v6 = vpop.f32.mrb[19].mxu0 }
0x1aec   :  { %v2621_v39 = vadd.f32 %v6059_v10, %v2620_v6 }
0x1aed   :  { %v2630_v8 = vmul.f32 %v2626_v12, %v2626_v12 }
0x1aee   :  { %v2629_v9 = vmul.f32 %v2621_v39, %v2621_v39 }
0x1aef   :  { %v2634_v11 = vsel %vm294_vm2, %v2630_v8, 0.0 }
0x1af0   :  { %2635 = vadd.xlane.f32.xlu1 %v2634_v11  ;;  %v2631_v15 = vsel %vm294_vm2, %v2629_v9, 0.0 }
0x1af1   :  { %2632 = vadd.xlane.f32.xlu0 %v2631_v15 }
0x1b7d   :  { %v2636_v16 = vpop.xlane.xlu1 %2635 }
0x1b7e   :  { %v2638_v17 = vmax.f32 %v2636_v16, 1e-24  ;;  %v2633_v44 = vpop.xlane.xlu0 %2632 }
0x1b7f   :  { %v2637_v22 = vmax.f32 %v2633_v44, 1e-24 }
0x1b80   :  { %5087 = vrsqrt.f32 %v2638_v17 }
0x1b81   :  { %5089 = vrsqrt.f32 %v2637_v22 }
0x1b8a   :  { %v5088_v24 = vpop.eup %5087 }
0x1b8b   :  { %v5090_v25 = vpop.eup %5089  ;;  %v2642_v26 = vmul.f32 %v5088_v24, %v2626_v12 }
0x1b8c   :  { %v2641_v30 = vmul.f32 %v5090_v25, %v2621_v39 }
0x1b8e   :  { %v4873_v14 = vpack.c.bf16 %v2642_v26, %v2641_v30 }
0x1b90   :  { %4874 = vmatprep.subr.bf16.mxu1 %v4873_v14 }
0x1b91   :  { %4876 = vmatpush3.bf16.msra.mxu1 %v4873_v14 }
0x1b92   :  { %4886 = vmatprep.subr.bf16.mxu1 %v5625_v23 }
0x1b94   :  { %4470 = vmatmul.mubr.msk.f32.vlgmr.msra.gmra.mrb[22].mxu1 %vm750_vm4, %v6066_v32 }
0x1b95   :  { %4888 = vmatpush3.bf16.msra.mxu1 %v5625_v23 }
0x1b96   :  { %4890 = vmatprep.subr.bf16.mxu1 %v5638_v28 }
0x1b99   :  { %4892 = vmatpush3.bf16.msra.mxu1 %v5638_v28 }
0x1b9a   :  { %4894 = vmatprep.subr.bf16.mxu1 %v5650_v31 }
0x1b9d   :  { %4896 = vmatpush3.bf16.msra.mxu1 %v5650_v31 }
0x1b9e   :  { %4898 = vmatprep.subr.bf16.mxu1 %v5688_v5 }
0x1ba1   :  { %4900 = vmatpush3.bf16.msra.mxu1 %v5688_v5 }
0x1ba2   :  { %4918 = vmatprep.subr.bf16.mxu1 %v5729_v29 }
0x1c67   :  { %v4471_v34 = vpop.f32.mrb[22].mxu1 }
0x1c68   :  { %v2709_v51 = vpop.f32.mrb[23].mxu1 }
0x1c69   :  { %4480 = vmatprep.mubr.msk.f32.mxu0 %vm294_vm2, %v2709_v51 }
0x1c6a   :  { %4481 = vmatmul.mubr.msk.f32.vlgmr.msra.gmra.mrb[16].mxu0 %vm294_vm2, %v4471_v34 }
0x1c6b   :  { %4904 = vmatpush3.bf16.msra.mxu0 %v5636_v27 }
0x1c6c   :  { %4906 = vmatprep.subr.bf16.mxu0 %v5663_v62 }
0x1c6f   :  { %4908 = vmatpush3.bf16.msra.mxu0 %v5663_v62 }
0x1c70   :  { %4910 = vmatprep.subr.bf16.mxu0 %v5674_v1 }
0x1c73   :  { %4912 = vmatpush3.bf16.msra.mxu0 %v5674_v1 }
0x1c74   :  { %4914 = vmatprep.subr.bf16.mxu0 %v5693_v7 }
0x1c77   :  { %4916 = vmatpush3.bf16.msra.mxu0 %v5693_v7 }
0x1d3d   :  { %v4482_v35 = vpop.f32.mrb[16].mxu0 }
0x1d3e   :  { %v2800_v37 = vadd.f32 %v6090_v54, %v4482_v35  ;;  %v2790_v38 = vpop.f32.mrb[17].mxu0 }
0x1d3f   :  { %v2799_v40 = vadd.f32 %v6090_v54, %v2790_v38 }
0x1d40   :  { %5091 = vtanh.f32 %v2800_v37 }
0x1d41   :  { %5093 = vtanh.f32 %v2799_v40 }
0x1d4a   :  { %v5092_v41 = vpop.eup %5091 }
0x1d4b   :  { %v5094_v42 = vpop.eup %5093  ;;  %v2804_v43 = vmul.f32 %v5092_v41, %v5092_v41 }
0x1d4c   :  { %v2803_v55 = vmul.f32 %v5094_v42, %v5094_v42 }
0x1d4d   :  { %v2808_v56 = vsel %vm436_vm3, %v2804_v43, 0.0 }
0x1d4e   :  { %2809 = vadd.xlane.f32.xlu1 %v2808_v56  ;;  %v2805_v46 = vsel %vm436_vm3, %v2803_v55, 0.0 }
0x1d4f   :  { %2806 = vadd.xlane.f32.xlu0 %v2805_v46 }
0x1ddb   :  { %v2810_v47 = vpop.xlane.xlu1 %2809 }
0x1ddc   :  { %v2812_v48 = vadd.f32 1e-16, %v2810_v47  ;;  %v2807_v49 = vpop.xlane.xlu0 %2806 }
0x1ddd   :  { %v2811_v50 = vadd.f32 1e-16, %v2807_v49 }
0x1dde   :  { %5095 = vrsqrt.f32 %v2812_v48 }
0x1ddf   :  { %5097 = vrsqrt.f32 %v2811_v50 }
0x1de8   :  { %v5096_v63 = vpop.eup %5095 }
0x1de9   :  { %v5098_v52 = vpop.eup %5097  ;;  %v2816_v36 = vmul.f32 5.0, %v5096_v63 }
0x1dea   :  { %v2815_v53 = vmul.f32 5.0, %v5098_v52 }
0x1deb   :  { %v2818_v3 = vmin.f32 %v2816_v36, 1.0 }
0x1dec   :  { %v2817_v57 = vmin.f32 %v2815_v53, 1.0 }
0x1ded   :  { %v2820_v58 = vmul.f32 %v5092_v41, %v2818_v3 }
0x1dee   :  { %v2819_v60 = vmul.f32 %v5094_v42, %v2817_v57 }
0x1def   :  { %v6097_v13 = vadd.f32 %v2820_v58, %v6011_v19  ;;  %v6115_v19 = vld [vmem:[#allocation2] sm:$0xff] }
0x1df0   :  { %v6100_v61 = vadd.f32 %v2819_v60, %v6014_v21 }
0x1df1   :  { %2825 = vst.msk [vmem:[#allocation17 + $0x58] sm:$0xff] %vm436_vm3, %v6097_v13 }
0x1df2   :  { %2824 = vst.msk [vmem:[#allocation17 + $0x50] sm:$0xff] %vm436_vm3, %v6100_v61  ;;  %4499 = vmatprep.mubr.msk.f32.mxu1 %vm436_vm3, %v6100_v61  ;;  %4518 = vmatprep.mubr.msk.f32.mxu0 %vm436_vm3, %v6100_v61 }
0x1df3   :  { %4500 = vmatmul.mubr.msk.f32.vlgmr.msra.gmra.mrb[24].mxu1 %vm436_vm3, %v6097_v13  ;;  %4519 = vmatmul.mubr.msk.f32.vlgmr.msra.gmra.mrb[20].mxu0 %vm436_vm3, %v6097_v13 }
0x1df4   :  { %4920 = vmatpush3.bf16.msra.mxu1 %v5729_v29  ;;  %4536 = vmatprep.mubr.msk.f32.mxu0 %vm750_vm4, %v6115_v19 }
0x1df5   :  { %4922 = vmatprep.subr.bf16.mxu1 %v5737_v33 }
0x1df8   :  { %4924 = vmatpush3.bf16.msra.mxu1 %v5737_v33 }
0x1df9   :  { %4930 = vmatprep.subr.bf16.mxu1 %v5766_v18 }
0x1ec6   :  { %v4520_v21 = vpop.f32.mrb[20].mxu0 }
0x1ec7   :  { %v2979_v0 = vadd.f32 %v6034_v45, %v4520_v21  ;;  %v2973_v2 = vpop.f32.mrb[21].mxu0 }
0x1ec8   :  { %v2974_v12 = vadd.f32 %v6034_v45, %v2973_v2 }
0x1ec9   :  { %v2985_v6 = vsel %vm294_vm2, %v2979_v0, 0.0  ;;  %v2991_v39 = vmul.f32 %v2979_v0, %v2979_v0 }
0x1eca   :  { %2986 = vadd.xlane.f32.xlu1 %v2985_v6  ;;  %v2982_v8 = vsel %vm294_vm2, %v2974_v12, 0.0  ;;  %v2990_v9 = vmul.f32 %v2974_v12, %v2974_v12 }
0x1ecb   :  { %2983 = vadd.xlane.f32.xlu0 %v2982_v8  ;;  %v2995_v11 = vsel %vm294_vm2, %v2991_v39, 0.0 }
0x1ecc   :  { %v2992_v15 = vsel %vm294_vm2, %v2990_v9, 0.0 }
0x1ece   :  { %2996 = vadd.xlane.f32.xlu1 %v2995_v11 }
0x1ecf   :  { %2993 = vadd.xlane.f32.xlu0 %v2992_v15 }
0x1f57   :  { %v2987_v16 = vpop.xlane.xlu1 %2986 }
0x1f58   :  { %v2989_v17 = vmul.f32 0.03125, %v2987_v16  ;;  %v2984_v44 = vpop.xlane.xlu0 %2983 }
0x1f59   :  { %v2988_v22 = vmul.f32 0.03125, %v2984_v44 }
0x1f5a   :  { %v3001_v25 = vmul.f32 %v2989_v17, %v2989_v17  ;;  %v3005_v40 = vsub.f32 %v2979_v0, %v2989_v17 }
0x1f5b   :  { %v2997_v24 = vpop.xlane.xlu1 %2996  ;;  %v3000_v14 = vmul.f32 %v2988_v22, %v2988_v22  ;;  %v3004_v42 = vsub.f32 %v2974_v12, %v2988_v22 }
0x1f5c   :  { %v2999_v26 = vmul.f32 0.03125, %v2997_v24  ;;  %v2994_v30 = vpop.xlane.xlu0 %2993 }
0x1f5d   :  { %v2998_v34 = vmul.f32 0.03125, %v2994_v30 }
0x1f5e   :  { %v3003_v51 = vsub.f32 %v2999_v26, %v3001_v25 }
0x1f5f   :  { %v3002_v35 = vsub.f32 %v2998_v34, %v3000_v14 }
0x1f60   :  { %v3007_v37 = vadd.f32 1e-05, %v3003_v51 }
0x1f61   :  { %v3006_v38 = vadd.f32 1e-05, %v3002_v35 }
0x1f62   :  { %5099 = vrsqrt.f32 %v3007_v37 }
0x1f63   :  { %5101 = vrsqrt.f32 %v3006_v38 }
0x1f6c   :  { %v5100_v41 = vpop.eup %5099 }
0x1f6d   :  { %v5102_v43 = vpop.eup %5101  ;;  %v3011_v55 = vmul.f32 %v5100_v41, %v3005_v40 }
0x1f6e   :  { %v3010_v56 = vmul.f32 %v5102_v43, %v3004_v42 }
0x1f6f   :  { %v3013_v46 = vmul.f32 %v6042_v4, %v3011_v55 }
0x1f70   :  { %v3012_v47 = vmul.f32 %v6042_v4, %v3010_v56 }
0x1f71   :  { %v3015_v48 = vadd.f32 %v6046_v59, %v3013_v46 }
0x1f72   :  { %v3014_v49 = vadd.f32 %v6046_v59, %v3012_v47 }
0x1f73   :  { %v3017_v63 = vmax.f32 %v3015_v48, 0.0 }
0x1f74   :  { %v3016_v50 = vmax.f32 %v3014_v49, 0.0 }
0x1f76   :  { %4529 = vmatprep.mubr.msk.f32.mxu1 %vm294_vm2, %v3016_v50 }
0x1f77   :  { %4530 = vmatmul.mubr.msk.f32.vlgmr.msra.gmra.mrb[26].mxu1 %vm294_vm2, %v3017_v63 }
0x1f78   :  { %4932 = vmatpush3.bf16.msra.mxu1 %v5766_v18 }
0x1f79   :  { %4934 = vmatprep.subr.bf16.mxu1 %v5768_v20 }
0x1f7c   :  { %4936 = vmatpush3.bf16.msra.mxu1 %v5768_v20 }
0x1f7d   :  { %4954 = vmatprep.subr.bf16.mxu1 %v5636_v27 }
0x204a   :  { %v4531_v52 = vpop.f32.mrb[26].mxu1 }
0x204b   :  { %v3096_v36 = vadd.f32 %v6059_v10, %v4531_v52  ;;  %v3090_v53 = vpop.f32.mrb[27].mxu1 }
0x204c   :  { %v3091_v3 = vadd.f32 %v6059_v10, %v3090_v53 }
0x204d   :  { %v3100_v57 = vmul.f32 %v3096_v36, %v3096_v36 }
0x204e   :  { %v3099_v58 = vmul.f32 %v3091_v3, %v3091_v3 }
0x204f   :  { %v3104_v60 = vsel %vm294_vm2, %v3100_v57, 0.0 }
0x2050   :  { %3105 = vadd.xlane.f32.xlu1 %v3104_v60  ;;  %v3101_v21 = vsel %vm294_vm2, %v3099_v58, 0.0 }
0x2051   :  { %3102 = vadd.xlane.f32.xlu0 %v3101_v21 }
0x20dd   :  { %v3106_v0 = vpop.xlane.xlu1 %3105 }
0x20de   :  { %v3108_v2 = vmax.f32 %v3106_v0, 1e-24  ;;  %v3103_v12 = vpop.xlane.xlu0 %3102 }
0x20df   :  { %v3107_v6 = vmax.f32 %v3103_v12, 1e-24 }
0x20e0   :  { %5103 = vrsqrt.f32 %v3108_v2 }
0x20e1   :  { %5105 = vrsqrt.f32 %v3107_v6 }
0x20ea   :  { %v5104_v39 = vpop.eup %5103 }
0x20eb   :  { %v5106_v8 = vpop.eup %5105  ;;  %v3112_v9 = vmul.f32 %v5104_v39, %v3096_v36 }
0x20ec   :  { %v3111_v11 = vmul.f32 %v5106_v8, %v3091_v3 }
0x20ee   :  { %v4925_v15 = vpack.c.bf16 %v3112_v9, %v3111_v11 }
0x20f0   :  { %4926 = vmatprep.subr.bf16.mxu0 %v4925_v15 }
0x20f1   :  { %4928 = vmatpush3.bf16.msra.mxu0 %v4925_v15 }
0x20f2   :  { %4938 = vmatprep.subr.bf16.mxu0 %v5625_v23 }
0x20f4   :  { %4537 = vmatmul.mubr.msk.f32.vlgmr.msra.gmra.mrb[22].mxu0 %vm750_vm4, %v6066_v32 }
0x20f5   :  { %4940 = vmatpush3.bf16.msra.mxu0 %v5625_v23 }
0x20f6   :  { %4942 = vmatprep.subr.bf16.mxu0 %v5638_v28 }
0x20f9   :  { %4944 = vmatpush3.bf16.msra.mxu0 %v5638_v28 }
0x20fa   :  { %4946 = vmatprep.subr.bf16.mxu0 %v5650_v31 }
0x20fd   :  { %4948 = vmatpush3.bf16.msra.mxu0 %v5650_v31 }
0x20fe   :  { %4950 = vmatprep.subr.bf16.mxu0 %v5688_v5 }
0x2101   :  { %4952 = vmatpush3.bf16.msra.mxu0 %v5688_v5 }
0x2102   :  { %4970 = vmatprep.subr.bf16.mxu0 %v5729_v29 }
0x21c7   :  { %v4538_v16 = vpop.f32.mrb[22].mxu0 }
0x21c8   :  { %v3179_v17 = vpop.f32.mrb[23].mxu0 }
0x21c9   :  { %4547 = vmatprep.mubr.msk.f32.mxu1 %vm294_vm2, %v3179_v17 }
0x21ca   :  { %4548 = vmatmul.mubr.msk.f32.vlgmr.msra.gmra.mrb[24].mxu1 %vm294_vm2, %v4538_v16 }
0x21cb   :  { %4956 = vmatpush3.bf16.msra.mxu1 %v5636_v27 }
0x21cc   :  { %4958 = vmatprep.subr.bf16.mxu1 %v5663_v62 }
0x21cf   :  { %4960 = vmatpush3.bf16.msra.mxu1 %v5663_v62 }
0x21d0   :  { %4962 = vmatprep.subr.bf16.mxu1 %v5674_v1 }
0x21d3   :  { %4964 = vmatpush3.bf16.msra.mxu1 %v5674_v1 }
0x21d4   :  { %4966 = vmatprep.subr.bf16.mxu1 %v5693_v7 }
0x21d7   :  { %4968 = vmatpush3.bf16.msra.mxu1 %v5693_v7 }
0x229d   :  { %v4549_v23 = vpop.f32.mrb[24].mxu1 }
0x229e   :  { %v3270_v28 = vadd.f32 %v6090_v54, %v4549_v23  ;;  %v3260_v31 = vpop.f32.mrb[25].mxu1 }
0x229f   :  { %v3269_v5 = vadd.f32 %v6090_v54, %v3260_v31 }
0x22a0   :  { %5107 = vtanh.f32 %v3270_v28 }
0x22a1   :  { %5109 = vtanh.f32 %v3269_v5 }
0x22aa   :  { %v5108_v27 = vpop.eup %5107 }
0x22ab   :  { %v5110_v44 = vpop.eup %5109  ;;  %v3274_v22 = vmul.f32 %v5108_v27, %v5108_v27 }
0x22ac   :  { %v3273_v62 = vmul.f32 %v5110_v44, %v5110_v44 }
0x22ad   :  { %v3278_v24 = vsel %vm436_vm3, %v3274_v22, 0.0 }
0x22ae   :  { %3279 = vadd.xlane.f32.xlu1 %v3278_v24  ;;  %v3275_v1 = vsel %vm436_vm3, %v3273_v62, 0.0 }
0x22af   :  { %3276 = vadd.xlane.f32.xlu0 %v3275_v1 }
0x233b   :  { %v3280_v25 = vpop.xlane.xlu1 %3279 }
0x233c   :  { %v3282_v7 = vadd.f32 1e-16, %v3280_v25  ;;  %v3277_v26 = vpop.xlane.xlu0 %3276 }
0x233d   :  { %v3281_v30 = vadd.f32 1e-16, %v3277_v26 }
0x233e   :  { %5111 = vrsqrt.f32 %v3282_v7 }
0x233f   :  { %5113 = vrsqrt.f32 %v3281_v30 }
0x2348   :  { %v5112_v14 = vpop.eup %5111 }
0x2349   :  { %v5114_v34 = vpop.eup %5113  ;;  %v3286_v51 = vmul.f32 5.0, %v5112_v14 }
0x234a   :  { %v3285_v35 = vmul.f32 5.0, %v5114_v34 }
0x234b   :  { %v3288_v37 = vmin.f32 %v3286_v51, 1.0 }
0x234c   :  { %v3287_v38 = vmin.f32 %v3285_v35, 1.0 }
0x234d   :  { %v3290_v40 = vmul.f32 %v5108_v27, %v3288_v37 }
0x234e   :  { %v3289_v41 = vmul.f32 %v5110_v44, %v3287_v38 }
0x234f   :  { %v6167_v42 = vadd.f32 %v3290_v40, %v6097_v13 }
0x2350   :  { %v6170_v43 = vadd.f32 %v3289_v41, %v6100_v61 }
0x2351   :  { %3295 = vst.msk [vmem:[#allocation17 + $0x68] sm:$0xff] %vm436_vm3, %v6167_v42 }
0x2352   :  { %3294 = vst.msk [vmem:[#allocation17 + $0x60] sm:$0xff] %vm436_vm3, %v6170_v43  ;;  %4566 = vmatprep.mubr.msk.f32.mxu0 %vm436_vm3, %v6170_v43  ;;  %4585 = vmatprep.mubr.msk.f32.mxu1 %vm436_vm3, %v6170_v43 }
0x2353   :  { %4567 = vmatmul.mubr.msk.f32.vlgmr.msra.gmra.mrb[24].mxu0 %vm436_vm3, %v6167_v42  ;;  %4586 = vmatmul.mubr.msk.f32.vlgmr.msra.gmra.mrb[28].mxu1 %vm436_vm3, %v6167_v42 }
0x2354   :  { %4972 = vmatpush3.bf16.msra.mxu0 %v5729_v29  ;;  %4603 = vmatprep.mubr.msk.f32.mxu1 %vm750_vm4, %v6115_v19 }
0x2355   :  { %4974 = vmatprep.subr.bf16.mxu0 %v5737_v33 }
0x2358   :  { %4976 = vmatpush3.bf16.msra.mxu0 %v5737_v33 }
0x2359   :  { %4982 = vmatprep.subr.bf16.mxu0 %v5766_v18 }
0x2426   :  { %v4587_v13 = vpop.f32.mrb[28].mxu1 }
0x2427   :  { %v3449_v61 = vadd.f32 %v6034_v45, %v4587_v13  ;;  %v3443_v55 = vpop.f32.mrb[29].mxu1 }
0x2428   :  { %v3444_v56 = vadd.f32 %v6034_v45, %v3443_v55 }
0x2429   :  { %v3455_v46 = vsel %vm294_vm2, %v3449_v61, 0.0  ;;  %v3461_v47 = vmul.f32 %v3449_v61, %v3449_v61 }
0x242a   :  { %3456 = vadd.xlane.f32.xlu1 %v3455_v46  ;;  %v3452_v29 = vsel %vm294_vm2, %v3444_v56, 0.0  ;;  %v3460_v48 = vmul.f32 %v3444_v56, %v3444_v56 }
0x242b   :  { %3453 = vadd.xlane.f32.xlu0 %v3452_v29  ;;  %v3465_v19 = vsel %vm294_vm2, %v3461_v47, 0.0 }
0x242c   :  { %v3462_v33 = vsel %vm294_vm2, %v3460_v48, 0.0 }
0x242e   :  { %3466 = vadd.xlane.f32.xlu1 %v3465_v19 }
0x242f   :  { %3463 = vadd.xlane.f32.xlu0 %v3462_v33 }
0x24b7   :  { %v3457_v49 = vpop.xlane.xlu1 %3456 }
0x24b8   :  { %v3459_v50 = vmul.f32 0.03125, %v3457_v49  ;;  %v3454_v63 = vpop.xlane.xlu0 %3453 }
0x24b9   :  { %v3458_v52 = vmul.f32 0.03125, %v3454_v63 }
0x24ba   :  { %v3471_v45 = vmul.f32 %v3459_v50, %v3459_v50  ;;  %v3475_v12 = vsub.f32 %v3449_v61, %v3459_v50 }
0x24bb   :  { %v3467_v36 = vpop.xlane.xlu1 %3466  ;;  %v3470_v57 = vmul.f32 %v3458_v52, %v3458_v52  ;;  %v3474_v39 = vsub.f32 %v3444_v56, %v3458_v52 }
0x24bc   :  { %v3469_v53 = vmul.f32 0.03125, %v3467_v36  ;;  %v3464_v3 = vpop.xlane.xlu0 %3463 }
0x24bd   :  { %v3468_v58 = vmul.f32 0.03125, %v3464_v3 }
0x24be   :  { %v3473_v60 = vsub.f32 %v3469_v53, %v3471_v45 }
0x24bf   :  { %v3472_v21 = vsub.f32 %v3468_v58, %v3470_v57 }
0x24c0   :  { %v3477_v0 = vadd.f32 1e-05, %v3473_v60 }
0x24c1   :  { %v3476_v2 = vadd.f32 1e-05, %v3472_v21 }
0x24c2   :  { %5115 = vrsqrt.f32 %v3477_v0 }
0x24c3   :  { %5117 = vrsqrt.f32 %v3476_v2 }
0x24cc   :  { %v5116_v6 = vpop.eup %5115 }
0x24cd   :  { %v5118_v8 = vpop.eup %5117  ;;  %v3481_v9 = vmul.f32 %v5116_v6, %v3475_v12 }
0x24ce   :  { %v3480_v11 = vmul.f32 %v5118_v8, %v3474_v39 }
0x24cf   :  { %v3483_v15 = vmul.f32 %v6042_v4, %v3481_v9 }
0x24d0   :  { %v3482_v16 = vmul.f32 %v6042_v4, %v3480_v11 }
0x24d1   :  { %v3485_v17 = vadd.f32 %v6046_v59, %v3483_v15 }
0x24d2   :  { %v3484_v23 = vadd.f32 %v6046_v59, %v3482_v16 }
0x24d3   :  { %v3487_v31 = vmax.f32 %v3485_v17, 0.0 }
0x24d4   :  { %v3486_v28 = vmax.f32 %v3484_v23, 0.0 }
0x24d6   :  { %4596 = vmatprep.mubr.msk.f32.mxu0 %vm294_vm2, %v3486_v28 }
0x24d7   :  { %4597 = vmatmul.mubr.msk.f32.vlgmr.msra.gmra.mrb[26].mxu0 %vm294_vm2, %v3487_v31 }
0x24d8   :  { %4984 = vmatpush3.bf16.msra.mxu0 %v5766_v18 }
0x24d9   :  { %4986 = vmatprep.subr.bf16.mxu0 %v5768_v20 }
0x24dc   :  { %4988 = vmatpush3.bf16.msra.mxu0 %v5768_v20 }
0x25aa   :  { %v4598_v5 = vpop.f32.mrb[26].mxu0 }
0x25ab   :  { %v3566_v27 = vadd.f32 %v6059_v10, %v4598_v5  ;;  %v3560_v4 = vpop.f32.mrb[27].mxu0 }
0x25ac   :  { %v3561_v44 = vadd.f32 %v6059_v10, %v3560_v4 }
0x25ad   :  { %v3570_v22 = vmul.f32 %v3566_v27, %v3566_v27 }
0x25ae   :  { %v3569_v59 = vmul.f32 %v3561_v44, %v3561_v44 }
0x25af   :  { %v3574_v62 = vsel %vm294_vm2, %v3570_v22, 0.0 }
0x25b0   :  { %3575 = vadd.xlane.f32.xlu1 %v3574_v62  ;;  %v3571_v24 = vsel %vm294_vm2, %v3569_v59, 0.0 }
0x25b1   :  { %3572 = vadd.xlane.f32.xlu0 %v3571_v24 }
0x263d   :  { %v3576_v1 = vpop.xlane.xlu1 %3575 }
0x263e   :  { %v3578_v18 = vmax.f32 %v3576_v1, 1e-24  ;;  %v3573_v25 = vpop.xlane.xlu0 %3572 }
0x263f   :  { %v3577_v7 = vmax.f32 %v3573_v25, 1e-24 }
0x2640   :  { %5119 = vrsqrt.f32 %v3578_v18 }
0x2641   :  { %5121 = vrsqrt.f32 %v3577_v7 }
0x264a   :  { %v5120_v20 = vpop.eup %5119 }
0x264b   :  { %v5122_v26 = vpop.eup %5121  ;;  %v3582_v30 = vmul.f32 %v5120_v20, %v3566_v27 }
0x264c   :  { %v3581_v14 = vmul.f32 %v5122_v26, %v3561_v44 }
0x264e   :  { %v4977_v34 = vpack.c.bf16 %v3582_v30, %v3581_v14 }
0x2650   :  { %4978 = vmatprep.subr.bf16.mxu1 %v4977_v34 }
0x2651   :  { %4980 = vmatpush3.bf16.msra.mxu1 %v4977_v34 }
0x2654   :  { %4604 = vmatmul.mubr.msk.f32.vlgmr.msra.gmra.mrb[30].mxu1 %vm750_vm4, %v6066_v32 }
0x2727   :  { %v4605_v10 = vpop.f32.mrb[30].mxu1 }
0x2728   :  { %v3649_v51 = vpop.f32.mrb[31].mxu1 }
0x2729   :  { %4614 = vmatprep.mubr.msk.f32.mxu0 %vm294_vm2, %v3649_v51 }
0x272a   :  { %4615 = vmatmul.mubr.msk.f32.vlgmr.msra.gmra.mrb[24].mxu0 %vm294_vm2, %v4605_v10 }
0x27fd   :  { %v4616_v35 = vpop.f32.mrb[24].mxu0 }
0x27fe   :  { %v3740_v37 = vadd.f32 %v6090_v54, %v4616_v35  ;;  %v3730_v38 = vpop.f32.mrb[25].mxu0 }
0x27ff   :  { %v3739_v40 = vadd.f32 %v6090_v54, %v3730_v38 }
0x2800   :  { %5123 = vtanh.f32 %v3740_v37 }
0x2801   :  { %5125 = vtanh.f32 %v3739_v40 }
0x280a   :  { %v5124_v41 = vpop.eup %5123 }
0x280b   :  { %v5126_v13 = vpop.eup %5125  ;;  %v3744_v61 = vmul.f32 %v5124_v41, %v5124_v41 }
0x280c   :  { %v3743_v55 = vmul.f32 %v5126_v13, %v5126_v13 }
0x280d   :  { %v3748_v32 = vsel %vm436_vm3, %v3744_v61, 0.0 }
0x280e   :  { %3749 = vadd.xlane.f32.xlu1 %v3748_v32  ;;  %v3745_v56 = vsel %vm436_vm3, %v3743_v55, 0.0 }
0x280f   :  { %3746 = vadd.xlane.f32.xlu0 %v3745_v56 }
0x289b   :  { %v3750_v46 = vpop.xlane.xlu1 %3749 }
0x289c   :  { %v3752_v47 = vadd.f32 1e-16, %v3750_v46  ;;  %v3747_v29 = vpop.xlane.xlu0 %3746 }
0x289d   :  { %v3751_v48 = vadd.f32 1e-16, %v3747_v29 }
0x289e   :  { %5127 = vrsqrt.f32 %v3752_v47 }
0x289f   :  { %5129 = vrsqrt.f32 %v3751_v48 }
0x28a8   :  { %v5128_v19 = vpop.eup %5127 }
0x28a9   :  { %v5130_v54 = vpop.eup %5129  ;;  %v3756_v33 = vmul.f32 5.0, %v5128_v19 }
0x28aa   :  { %v3755_v49 = vmul.f32 5.0, %v5130_v54 }
0x28ab   :  { %v3758_v50 = vmin.f32 %v3756_v33, 1.0 }
0x28ac   :  { %v3757_v63 = vmin.f32 %v3755_v49, 1.0 }
0x28ad   :  { %v3760_v52 = vmul.f32 %v5124_v41, %v3758_v50 }
0x28ae   :  { %v3759_v36 = vmul.f32 %v5126_v13, %v3757_v63 }
0x28af   :  { %v3762_v45 = vadd.f32 %v3760_v52, %v6167_v42 }
0x28b0   :  { %v3761_v53 = vadd.f32 %v3759_v36, %v6170_v43 }
0x28b1   :  { %3765 = vst.msk [vmem:[#allocation17 + $0x78] sm:$0xff] %vm436_vm3, %v3762_v45 }
0x28b2   :  { %3764 = vst.msk [vmem:[#allocation17 + $0x70] sm:$0xff] %vm436_vm3, %v3761_v53 }
0x28b3   :  { %5347 = shalt.err (!%p5344_p6)
}
0x28b4   :  { %s5348_s30 = scalar_lea.hbm %s6253_s17, 2048 }
0x28b5   :  { %p5349_p7 = scmp.ne.s32.totalorder %s6253_s17, %s5348_s30  ;;  %p5352_p8 = scmp.lt.u32.totalorder %s5348_s30, %s6253_s17 }
0x28b7   :  { %p5354_p9 = pnand %p5352_p8, %p5349_p7 }
0x28b9   :  { %5357 = shalt.err (!%p5354_p9)
}
0x28ba   :  { %3777 = dma.vmem_to_hbm [thread:$0]  %s3772_s2, 2048, %s6253_s17, [#allocation4], %s5375_s11, %s5375_s11, %s5376_s22  }
0x28bb   :  { %5368 = dma.done.wait [#allocation4], 2048  }
0x28bc   :  { %5369 = vsyncadd [#allocation4], 4294965248 }
0x28bd   :  { %3781 = vsyncpa [#allocation3], 1 }
0x28be   :  { %3782 = vsyncpa [#allocation6], 1 }
0x28bf   :  { %3783 = vsyncpa [#allocation9], 1 }
0x28c0   :  { %3784 = vsyncpa [#allocation12], 1 }
0x28c1   :  { %3785 = vsyncpa [#allocation15], 1 }
0x28c2   :  { %3786 = vsyncpa [#allocation4], 1 }

</bundles_post_ra>
